<compile_context>
chip_gen: v7x
topology: tpu7x:2x2x1
jax: 0.10.0
libtpu: 0.0.40
codegen_flags: <defaults>
</compile_context>

<pallas_src>
import functools
import math

import jax
import jax.numpy as jnp
from jax.experimental import pallas as pl
from jax.experimental.pallas import tpu as pltpu

INPUT_SIZE = 28 * 28      # 784
HIDDEN = 500
OUTPUT_SIZE = 10

# lane-aligned (multiples of 128) padded feature dims
IN_PAD = 896              # 784 -> 7*128
HID_PAD = 512             # 500 -> 4*128
OUT_PAD = 128             # 10  -> 1*128


def _round_up(x, m):
    return (x + m - 1) // m * m


def mlp_kernel(x_ref, w1_ref, w2_ref, w3_ref, w4_ref, b_ref, o_ref):
    # All matmuls run bf16 x bf16 on the MXU with f32 accumulation.
    # Bias-add + bf16 downcast fused -> only the bf16 intermediate lives between layers.
    h = (jnp.dot(x_ref[...], w1_ref[...], preferred_element_type=jnp.float32)
         + b_ref[0:1, :]).astype(jnp.bfloat16)
    h = (jnp.dot(h, w2_ref[...], preferred_element_type=jnp.float32)
         + b_ref[1:2, :]).astype(jnp.bfloat16)
    h = (jnp.dot(h, w3_ref[...], preferred_element_type=jnp.float32)
         + b_ref[2:3, :]).astype(jnp.bfloat16)
    o_ref[...] = (jnp.dot(h, w4_ref[...], preferred_element_type=jnp.float32)
                  + b_ref[3:4, :OUT_PAD])


def prepare_params(params):
    """Zero-pad to lane-aligned shapes; weights -> bf16, biases merged into one f32 buffer.

    Call ONCE (outside the per-step path) and reuse the returned tuple."""
    (w1, b1), (w2, b2), (w3, b3), (w4, b4) = params

    def pad_w(w, rows, cols):
        return jnp.pad(w, ((0, rows - w.shape[0]), (0, cols - w.shape[1]))).astype(jnp.bfloat16)

    def pad_b(bias):
        bias = bias.reshape(-1)
        return jnp.pad(bias, (0, HID_PAD - bias.shape[0]))

    w1p = pad_w(w1, IN_PAD, HID_PAD)
    w2p = pad_w(w2, HID_PAD, HID_PAD)
    w3p = pad_w(w3, HID_PAD, HID_PAD)
    w4p = pad_w(w4, HID_PAD, OUT_PAD)
    biases = jnp.stack([pad_b(b1), pad_b(b2), pad_b(b3), pad_b(b4)]).astype(jnp.float32)
    return w1p, w2p, w3p, w4p, biases


@functools.partial(jax.jit, static_argnames=("tile_b",))
def mlp_forward(x_nchw, prepared, tile_b=512):
    """x_nchw: (B, 1, 28, 28) float32.  prepared = prepare_params(params).
    Returns (B, OUTPUT_SIZE) float32."""
    w1p, w2p, w3p, w4p, biases = prepared

    b, c, h, w = x_nchw.shape
    assert c == 1 and h * w == INPUT_SIZE, "forward reshapes to (B, H*W) with channel == 1"

    # Flatten, cast activations to bf16, pad features 784 -> 896 (zero lanes hit zero weight rows).
    x = x_nchw.reshape(b, INPUT_SIZE).astype(jnp.bfloat16)
    x = jnp.pad(x, ((0, 0), (0, IN_PAD - INPUT_SIZE)))

    # --- batch tiling -------------------------------------------------------
    # bf16 packs 16 sublanes per vreg -> keep batch padding / tiles 16-row aligned.
    b16 = _round_up(b, 16)
    tb_cap = max(min(tile_b, b16), 16)
    num_tiles = max(pl.cdiv(b16, tb_cap), 1)
    if num_tiles == 1 and b16 > 16:
        num_tiles = 2                      # ensure both v7x TensorCores get a tile
    tb = _round_up(pl.cdiv(b16, num_tiles), 16)
    b_pad = tb * num_tiles
    if b_pad != b:
        x = jnp.pad(x, ((0, b_pad - b), (0, 0)))

    flops = 2 * b_pad * (IN_PAD * HID_PAD + 2 * HID_PAD * HID_PAD + HID_PAD * OUT_PAD)
    bytes_accessed = (
        x.size * x.dtype.itemsize
        + sum(a.size * a.dtype.itemsize for a in (w1p, w2p, w3p, w4p, biases))
        + b_pad * OUT_PAD * 4
    )

    out = pl.pallas_call(
        mlp_kernel,
        out_shape=jax.ShapeDtypeStruct((b_pad, OUT_PAD), jnp.float32),
        grid_spec=pl.GridSpec(
            grid=(num_tiles,),
            in_specs=[
                pl.BlockSpec((tb, IN_PAD), lambda i: (i, 0)),          # x tile (streams)
                pl.BlockSpec((IN_PAD, HID_PAD), lambda i: (0, 0)),     # w1 (resident)
                pl.BlockSpec((HID_PAD, HID_PAD), lambda i: (0, 0)),    # w2 (resident)
                pl.BlockSpec((HID_PAD, HID_PAD), lambda i: (0, 0)),    # w3 (resident)
                pl.BlockSpec((HID_PAD, OUT_PAD), lambda i: (0, 0)),    # w4 (resident)
                pl.BlockSpec((4, HID_PAD), lambda i: (0, 0)),          # merged biases
            ],
            out_specs=pl.BlockSpec((tb, OUT_PAD), lambda i: (i, 0)),
        ),
        compiler_params=pltpu.CompilerParams(
            dimension_semantics=("parallel",),     # batch tiles split across v7x TCs
            vmem_limit_bytes=28 * 1024 * 1024,     # covers tb up to 1024 even on v5e
        ),
        cost_estimate=pl.CostEstimate(
            flops=flops, transcendentals=0, bytes_accessed=bytes_accessed),
    )(x, w1p, w2p, w3p, w4p, biases)

    return out[:b, :OUTPUT_SIZE]


def init_linear(key, fan_in, fan_out):
    """nn.Linear default init: U(-1/sqrt(fan_in), 1/sqrt(fan_in)).
    Weight stored as (fan_in, fan_out) so the kernel computes x @ W (== torch x @ W.T)."""
    kw, kb = jax.random.split(key)
    bound = 1.0 / math.sqrt(fan_in)
    w = jax.random.uniform(kw, (fan_in, fan_out), jnp.float32, -bound, bound)
    b = jax.random.uniform(kb, (1, fan_out), jnp.float32, -bound, bound)
    return w, b


if __name__ == "__main__":
    key = jax.random.PRNGKey(0)
    k_x, k1, k2, k3, k4 = jax.random.split(key, 5)

    B = 8
    x = jax.random.normal(k_x, (B, 1, 28, 28), jnp.float32)

    params = (
        init_linear(k1, INPUT_SIZE, HIDDEN),
        init_linear(k2, HIDDEN, HIDDEN),
        init_linear(k3, HIDDEN, HIDDEN),
        init_linear(k4, HIDDEN, OUTPUT_SIZE),
    )

    # Weight prep hoisted out of the forward path: done once, reused for every call.
    prepared = jax.block_until_ready(prepare_params(params))

    out = mlp_forward(x, prepared)
    out = jax.block_until_ready(out)
    assert out.shape == (B, OUTPUT_SIZE)

    # Reference: same bf16-weight / f32-accumulation chain in plain JAX.
    w1p, w2p, w3p, w4p, biases = prepared
    xf = jnp.pad(x.reshape(B, INPUT_SIZE),
                 ((0, 0), (0, IN_PAD - INPUT_SIZE))).astype(jnp.bfloat16)
    hr = (jnp.dot(xf, w1p, preferred_element_type=jnp.float32) + biases[0:1, :]).astype(jnp.bfloat16)
    hr = (jnp.dot(hr, w2p, preferred_element_type=jnp.float32) + biases[1:2, :]).astype(jnp.bfloat16)
    hr = (jnp.dot(hr, w3p, preferred_element_type=jnp.float32) + biases[2:3, :]).astype(jnp.bfloat16)
    ref = jnp.dot(hr, w4p, preferred_element_type=jnp.float32) + biases[3:4, :OUT_PAD]
    ref = ref[:, :OUTPUT_SIZE]

    assert jnp.allclose(out, ref, atol=1e-2, rtol=1e-2)
    print("KERNEL_OK")
</pallas_src>

<mosaic_0001>
module attributes {stable_mosaic.version = 11 : i64} {
  func.func @mlp_kernel(%arg0: i32, %arg1: memref<16x896xbf16, #tpu.memory_space<vmem>>, %arg2: memref<896x512xbf16, #tpu.memory_space<vmem>>, %arg3: memref<512x512xbf16, #tpu.memory_space<vmem>>, %arg4: memref<512x512xbf16, #tpu.memory_space<vmem>>, %arg5: memref<512x128xbf16, #tpu.memory_space<vmem>>, %arg6: memref<4x512xf32, #tpu.memory_space<vmem>>, %arg7: memref<16x128xf32, #tpu.memory_space<vmem>>) attributes {dimension_semantics = [#tpu.dimension_semantics<parallel>], iteration_bounds = array<i64: 1>, scalar_prefetch = 0 : i64, scratch_operands = 0 : i64, tpu.core_type = #tpu.core_type<tc>, window_params = [{transform_indices = @transform_0, window_bounds = array<i64: 16, 896>}, {pipeline_mode = #tpu.pipeline_mode<synchronous>, transform_indices = @transform_1, window_bounds = array<i64: 896, 512>}, {pipeline_mode = #tpu.pipeline_mode<synchronous>, transform_indices = @transform_2, window_bounds = array<i64: 512, 512>}, {pipeline_mode = #tpu.pipeline_mode<synchronous>, transform_indices = @transform_3, window_bounds = array<i64: 512, 512>}, {pipeline_mode = #tpu.pipeline_mode<synchronous>, transform_indices = @transform_4, window_bounds = array<i64: 512, 128>}, {pipeline_mode = #tpu.pipeline_mode<synchronous>, transform_indices = @transform_5, window_bounds = array<i64: 4, 512>}, {transform_indices = @transform_6, window_bounds = array<i64: 16, 128>}]} {
    %c0 = arith.constant 0 : index
    %c0_0 = arith.constant 0 : index
    %0 = vector.load %arg1[%c0, %c0_0] : memref<16x896xbf16, #tpu.memory_space<vmem>>, vector<16x896xbf16>
    %c0_1 = arith.constant 0 : index
    %c0_2 = arith.constant 0 : index
    %1 = vector.load %arg2[%c0_1, %c0_2] : memref<896x512xbf16, #tpu.memory_space<vmem>>, vector<896x512xbf16>
    %cst = arith.constant dense<0.000000e+00> : vector<16x512xf32>
    %2 = tpu.matmul %0, %1, %cst {dimension_numbers = #tpu.dot_dimension_numbers<[1], [0], [0], [1], [0, 0, 1, 1], [], []>} : vector<16x896xbf16>, vector<896x512xbf16>, vector<16x512xf32> -> vector<16x512xf32>
    %c0_3 = arith.constant 0 : index
    %c0_4 = arith.constant 0 : index
    %3 = vector.load %arg6[%c0_3, %c0_4] : memref<4x512xf32, #tpu.memory_space<vmem>>, vector<1x512xf32>
    %4 = vector.broadcast %3 : vector<1x512xf32> to vector<16x512xf32>
    %5 = arith.addf %2, %4 : vector<16x512xf32>
    %6 = arith.truncf %5 : vector<16x512xf32> to vector<16x512xbf16>
    %c0_5 = arith.constant 0 : index
    %c0_6 = arith.constant 0 : index
    %7 = vector.load %arg3[%c0_5, %c0_6] : memref<512x512xbf16, #tpu.memory_space<vmem>>, vector<512x512xbf16>
    %cst_7 = arith.constant dense<0.000000e+00> : vector<16x512xf32>
    %8 = tpu.matmul %6, %7, %cst_7 {dimension_numbers = #tpu.dot_dimension_numbers<[1], [0], [0], [1], [0, 0, 1, 1], [], []>} : vector<16x512xbf16>, vector<512x512xbf16>, vector<16x512xf32> -> vector<16x512xf32>
    %c1 = arith.constant 1 : index
    %c0_8 = arith.constant 0 : index
    %9 = vector.load %arg6[%c1, %c0_8] : memref<4x512xf32, #tpu.memory_space<vmem>>, vector<1x512xf32>
    %10 = vector.broadcast %9 : vector<1x512xf32> to vector<16x512xf32>
    %11 = arith.addf %8, %10 : vector<16x512xf32>
    %12 = arith.truncf %11 : vector<16x512xf32> to vector<16x512xbf16>
    %c0_9 = arith.constant 0 : index
    %c0_10 = arith.constant 0 : index
    %13 = vector.load %arg4[%c0_9, %c0_10] : memref<512x512xbf16, #tpu.memory_space<vmem>>, vector<512x512xbf16>
    %cst_11 = arith.constant dense<0.000000e+00> : vector<16x512xf32>
    %14 = tpu.matmul %12, %13, %cst_11 {dimension_numbers = #tpu.dot_dimension_numbers<[1], [0], [0], [1], [0, 0, 1, 1], [], []>} : vector<16x512xbf16>, vector<512x512xbf16>, vector<16x512xf32> -> vector<16x512xf32>
    %c2 = arith.constant 2 : index
    %c0_12 = arith.constant 0 : index
    %15 = vector.load %arg6[%c2, %c0_12] : memref<4x512xf32, #tpu.memory_space<vmem>>, vector<1x512xf32>
    %16 = vector.broadcast %15 : vector<1x512xf32> to vector<16x512xf32>
    %17 = arith.addf %14, %16 : vector<16x512xf32>
    %18 = arith.truncf %17 : vector<16x512xf32> to vector<16x512xbf16>
    %c0_13 = arith.constant 0 : index
    %c0_14 = arith.constant 0 : index
    %19 = vector.load %arg5[%c0_13, %c0_14] : memref<512x128xbf16, #tpu.memory_space<vmem>>, vector<512x128xbf16>
    %cst_15 = arith.constant dense<0.000000e+00> : vector<16x128xf32>
    %20 = tpu.matmul %18, %19, %cst_15 {dimension_numbers = #tpu.dot_dimension_numbers<[1], [0], [0], [1], [0, 0, 1, 1], [], []>} : vector<16x512xbf16>, vector<512x128xbf16>, vector<16x128xf32> -> vector<16x128xf32>
    %c3 = arith.constant 3 : index
    %c0_16 = arith.constant 0 : index
    %21 = vector.load %arg6[%c3, %c0_16] : memref<4x512xf32, #tpu.memory_space<vmem>>, vector<1x128xf32>
    %22 = vector.broadcast %21 : vector<1x128xf32> to vector<16x128xf32>
    %23 = arith.addf %20, %22 : vector<16x128xf32>
    %c0_17 = arith.constant 0 : index
    %c0_18 = arith.constant 0 : index
    %24 = vector.load %arg7[%c0_17, %c0_18] : memref<16x128xf32, #tpu.memory_space<vmem>>, vector<16x128xf32>
    tpu.vector_store %arg7[%c0_17, %c0_18], %23 {strides = array<i32>} : memref<16x128xf32, #tpu.memory_space<vmem>>, vector<16x128xf32>,
    return
  }
  func.func @transform_0(%arg0: i32) -> (i32, i32) {
    %c0_i32 = arith.constant 0 : i32
    %c0_i32_0 = arith.constant 0 : i32
    return %arg0, %c0_i32 : i32, i32
  }
  func.func @transform_1(%arg0: i32) -> (i32, i32) {
    %c0_i32 = arith.constant 0 : i32
    %c0_i32_0 = arith.constant 0 : i32
    %c0_i32_1 = arith.constant 0 : i32
    return %c0_i32, %c0_i32_0 : i32, i32
  }
  func.func @transform_2(%arg0: i32) -> (i32, i32) {
    %c0_i32 = arith.constant 0 : i32
    %c0_i32_0 = arith.constant 0 : i32
    %c0_i32_1 = arith.constant 0 : i32
    return %c0_i32, %c0_i32_0 : i32, i32
  }
  func.func @transform_3(%arg0: i32) -> (i32, i32) {
    %c0_i32 = arith.constant 0 : i32
    %c0_i32_0 = arith.constant 0 : i32
    %c0_i32_1 = arith.constant 0 : i32
    return %c0_i32, %c0_i32_0 : i32, i32
  }
  func.func @transform_4(%arg0: i32) -> (i32, i32) {
    %c0_i32 = arith.constant 0 : i32
    %c0_i32_0 = arith.constant 0 : i32
    %c0_i32_1 = arith.constant 0 : i32
    return %c0_i32, %c0_i32_0 : i32, i32
  }
  func.func @transform_5(%arg0: i32) -> (i32, i32) {
    %c0_i32 = arith.constant 0 : i32
    %c0_i32_0 = arith.constant 0 : i32
    %c0_i32_1 = arith.constant 0 : i32
    return %c0_i32, %c0_i32_0 : i32, i32
  }
  func.func @transform_6(%arg0: i32) -> (i32, i32) {
    %c0_i32 = arith.constant 0 : i32
    %c0_i32_0 = arith.constant 0 : i32
    return %arg0, %c0_i32 : i32, i32
  }
}

</mosaic_0001>

<bundles_post_ra>
// kernel: mlp_forward.1
= control target key start
LH: loop header
LB: loop body
LE: loop exit
PB: predicated region body
PF: predicated region fallthrough
CT: control target
= control target key end

     0   :  { %11 = vsyncpa [#allocation3], 0  ;;  %s5832_s0 = inlined_call_operand.vmem [shape: bf16[16,896], index: 0, kind: input, shape index: {}]   ;;  %s5833_s1 = inlined_call_operand.hbm [shape: bf16[896,512], index: 1, kind: input, shape index: {}]   ;;  %s5834_s2 = inlined_call_operand.hbm [shape: bf16[512,512], index: 2, kind: input, shape index: {}]   ;;  %s5835_s3 = inlined_call_operand.hbm [shape: bf16[512,512], index: 3, kind: input, shape index: {}]   ;;  %s5836_s4 = inlined_call_operand.vmem [shape: bf16[512,128], index: 4, kind: input, shape index: {}]   ;;  %s5837_s5 = inlined_call_operand.vmem [shape: f32[4,512], index: 5, kind: input, shape index: {}]   ;;  %s5838_s6 = inlined_call_operand.vmem [shape: f32[16,128], index: 6, kind: output, shape index: {}]  }
   0x1   :  { %12 = vsyncpa [#allocation5], 0  ;;  %s5576_s21 = smov [#allocation4]   ;;  %s5577_s23 = smov [#allocation2]  }
   0x2   :  { %s32_s22 = sshll.u32 %s5576_s21, 4  ;;  %s20_s24 = sshll.u32 %s5577_s23, 4  ;;  %s33_s22 = int_to_ptr.vmem [resolvable:$true] %s32_s22  ;;  %s5617_s24 = int_to_ptr.vmem [resolvable:$true] %s20_s24 }
   0x3   :  { %s5506_s27 = scalar_lea.hbm %s5834_s2, 16384 }
   0x4   :  { %p5507_p0 = scmp.ne.s32.totalorder %s5834_s2, %s5506_s27  ;;  %p5510_p1 = scmp.lt.u32.totalorder %s5506_s27, %s5834_s2 }
   0x6   :  { %p5512_p2 = pnand %p5510_p1, %p5507_p0 }
   0x8   :  { %5515 = shalt.err (!%p5512_p2)
}
   0x9   :  { %s5516_s8 = scalar_lea.vmem %s33_s22, 16384  ;;  %p5521_p4 = scmp.lt.s32.totalorder %s33_s22, %s33_s22 }
   0xa   :  { %p5517_p3 = scmp.ne.s32.totalorder %s33_s22, %s5516_s8  ;;  %p5522_p5 = scmp.lt.s32.totalorder %s5516_s8, %s5516_s8 }
   0xc   :  { %p5523_p6 = por %p5522_p5, %p5521_p4 }
   0xe   :  { %p5524_p7 = pnand %p5523_p6, %p5517_p3 }
  0x10   :  { %5527 = shalt.err (!%p5524_p7)
}
  0x11   :  { %s5578_s9 = smov 256   ;;  %s5579_s10 = smov 16  }
  0x12   :  { %38 = dma.hbm_to_vmem [thread:$0]  %s5834_s2, 16384, %s33_s22, [#allocation5], %s5578_s9, %s5578_s9, %s5579_s10  }
  0x13   :  { %s5528_s15 = scalar_lea.hbm %s5833_s1, 28672 }
  0x14   :  { %p5529_p8 = scmp.ne.s32.totalorder %s5833_s1, %s5528_s15  ;;  %p5532_p9 = scmp.lt.u32.totalorder %s5528_s15, %s5833_s1 }
  0x16   :  { %p5534_p10 = pnand %p5532_p9, %p5529_p8 }
  0x18   :  { %5537 = shalt.err (!%p5534_p10)
}
  0x19   :  { %s5538_s20 = scalar_lea.vmem %s5617_s24, 28672  ;;  %p5543_p12 = scmp.lt.s32.totalorder %s5617_s24, %s5617_s24 }
  0x1a   :  { %p5539_p11 = scmp.ne.s32.totalorder %s5617_s24, %s5538_s20  ;;  %p5544_p13 = scmp.lt.s32.totalorder %s5538_s20, %s5538_s20 }
  0x1c   :  { %p5545_p0 = por %p5544_p13, %p5543_p12 }
  0x1e   :  { %p5546_p1 = pnand %p5545_p0, %p5539_p11 }
  0x20   :  { %5549 = shalt.err (!%p5546_p1)
}
  0x21   :  { %26 = dma.hbm_to_vmem [thread:$0]  %s5833_s1, 28672, %s5617_s24, [#allocation3], %s5578_s9, %s5578_s9, %s5579_s10  }
  0x22   :  { %s5580_s22 = smov [#allocation6]   ;;  %s5550_s27 = scalar_lea.hbm %s5835_s3, 16384 }
  0x23   :  { %s44_s23 = sshll.u32 %s5580_s22, 4  ;;  %p5551_p2 = scmp.ne.s32.totalorder %s5835_s3, %s5550_s27  ;;  %s45_s23 = int_to_ptr.vmem [resolvable:$true] %s44_s23 }
  0x24   :  { %p5554_p3 = scmp.lt.u32.totalorder %s5550_s27, %s5835_s3 }
  0x26   :  { %p5556_p4 = pnand %p5554_p3, %p5551_p2 }
  0x28   :  { %5559 = shalt.err (!%p5556_p4)
}
  0x29   :  { %s5560_s8 = scalar_lea.vmem %s45_s23, 16384  ;;  %p5565_p6 = scmp.lt.s32.totalorder %s45_s23, %s45_s23 }
  0x2a   :  { %p5561_p5 = scmp.ne.s32.totalorder %s45_s23, %s5560_s8  ;;  %p5566_p7 = scmp.lt.s32.totalorder %s5560_s8, %s5560_s8 }
  0x2c   :  { %p5567_p8 = por %p5566_p7, %p5565_p6 }
  0x2e   :  { %p5568_p9 = pnand %p5567_p8, %p5561_p5 }
  0x30   :  { %5571 = shalt.err (!%p5568_p9)
}
  0x31   :  { %50 = dma.hbm_to_vmem [thread:$0]  %s5835_s3, 16384, %s45_s23, [#allocation5], %s5578_s9, %s5578_s9, %s5579_s10  }
  0x32   :  { %5572 = dma.done.wait [#allocation3], 28672  }
  0x33   :  { %5573 = vsyncadd [#allocation3], 4294938624 }
  0x34   :  { %5574 = dma.done.wait [#allocation5], 32768  }
  0x35   :  { %5575 = vsyncadd [#allocation5], 4294934528  ;;  %v4744_v0 = vld [vmem:[#allocation2 + $0x4] ss:$16 sps:$4 sm:$0xff]   ;;  %v4746_v1 = vld [vmem:[#allocation2 + $0xc] ss:$16 sps:$4 sm:$0xff]  }
  0x36   :  { %1475 = vmatprep.subr.bf16.mxu0 %v4744_v0  ;;  %v4748_v2 = vld [vmem:[#allocation2] ss:$16 sps:$4 sm:$0xff]   ;;  %v4749_v3 = vld [vmem:[#allocation2 + $0x8] ss:$16 sps:$4 sm:$0xff]   ;;  %1647 = vmatprep.subr.bf16.mxu1 %v4746_v1  ;;  %v4750_v4 = vld [vmem:[#allocation2 + $0x24] ss:$16 sps:$4 sm:$0xff]  }
  0x37   :  { %1476 = vmatpush1.bf16.msra.mxu0 %v4748_v2  ;;  %1648 = vmatpush1.bf16.msra.mxu1 %v4749_v3  ;;  %v4752_v5 = vld [vmem:[#allocation2 + $0x2c] ss:$16 sps:$4 sm:$0xff]   ;;  %v4754_v6 = vld [vmem:[#allocation2 + $0x20] ss:$16 sps:$4 sm:$0xff]   ;;  %v4755_v7 = vld [vmem:[#allocation2 + $0x28] ss:$16 sps:$4 sm:$0xff]  }
  0x38   :  { %1477 = vmatprep.subr.bf16.mxu0 %v4750_v4  ;;  %1649 = vmatprep.subr.bf16.mxu1 %v4752_v5  ;;  %v4756_v8 = vld [vmem:[#allocation2 + $0x44] ss:$16 sps:$4 sm:$0xff]   ;;  %v4758_v9 = vld [vmem:[#allocation2 + $0x4c] ss:$16 sps:$4 sm:$0xff]   ;;  %v4760_v10 = vld [vmem:[#allocation2 + $0x40] ss:$16 sps:$4 sm:$0xff]  }
  0x39   :  { %v4761_v11 = vld [vmem:[#allocation2 + $0x48] ss:$16 sps:$4 sm:$0xff]   ;;  %v4762_v12 = vld [vmem:[#allocation2 + $0x64] ss:$16 sps:$4 sm:$0xff]   ;;  %v4764_v13 = vld [vmem:[#allocation2 + $0x6c] ss:$16 sps:$4 sm:$0xff]  }
  0x3a   :  { %v4766_v14 = vld [vmem:[#allocation2 + $0x60] ss:$16 sps:$4 sm:$0xff]   ;;  %v4767_v15 = vld [vmem:[#allocation2 + $0x68] ss:$16 sps:$4 sm:$0xff]   ;;  %v4768_v16 = vld [vmem:[#allocation2 + $0x84] ss:$16 sps:$4 sm:$0xff]  }
  0x3b   :  { %1478 = vmatpush1.bf16.msra.mxu0 %v4754_v6  ;;  %1650 = vmatpush1.bf16.msra.mxu1 %v4755_v7  ;;  %v4770_v17 = vld [vmem:[#allocation2 + $0x8c] ss:$16 sps:$4 sm:$0xff]   ;;  %v4772_v18 = vld [vmem:[#allocation2 + $0x80] ss:$16 sps:$4 sm:$0xff]   ;;  %v4773_v19 = vld [vmem:[#allocation2 + $0x88] ss:$16 sps:$4 sm:$0xff]  }
  0x3c   :  { %1479 = vmatprep.subr.bf16.mxu0 %v4756_v8  ;;  %1651 = vmatprep.subr.bf16.mxu1 %v4758_v9  ;;  %v4774_v20 = vld [vmem:[#allocation2 + $0xa4] ss:$16 sps:$4 sm:$0xff]   ;;  %v4776_v21 = vld [vmem:[#allocation2 + $0xac] ss:$16 sps:$4 sm:$0xff]   ;;  %v4778_v22 = vld [vmem:[#allocation2 + $0xa0] ss:$16 sps:$4 sm:$0xff]  }
  0x3d   :  { %v4779_v23 = vld [vmem:[#allocation2 + $0xa8] ss:$16 sps:$4 sm:$0xff]   ;;  %v4780_v24 = vld [vmem:[#allocation2 + $0xc4] ss:$16 sps:$4 sm:$0xff]   ;;  %v4782_v25 = vld [vmem:[#allocation2 + $0xcc] ss:$16 sps:$4 sm:$0xff]  }
  0x3e   :  { %v4784_v26 = vld [vmem:[#allocation2 + $0xc0] ss:$16 sps:$4 sm:$0xff]   ;;  %v4785_v27 = vld [vmem:[#allocation2 + $0xc8] ss:$16 sps:$4 sm:$0xff]   ;;  %v4786_v28 = vld [vmem:[#allocation2 + $0xe4] ss:$16 sps:$4 sm:$0xff]  }
  0x3f   :  { %1480 = vmatpush1.bf16.msra.mxu0 %v4760_v10  ;;  %1652 = vmatpush1.bf16.msra.mxu1 %v4761_v11  ;;  %v4788_v29 = vld [vmem:[#allocation2 + $0xec] ss:$16 sps:$4 sm:$0xff]   ;;  %v4790_v30 = vld [vmem:[#allocation2 + $0xe0] ss:$16 sps:$4 sm:$0xff]   ;;  %v4791_v31 = vld [vmem:[#allocation2 + $0xe8] ss:$16 sps:$4 sm:$0xff]  }
  0x40   :  { %1481 = vmatprep.subr.bf16.mxu0 %v4762_v12  ;;  %1653 = vmatprep.subr.bf16.mxu1 %v4764_v13  ;;  %v4792_v32 = vld [vmem:[#allocation2 + $0x104] ss:$16 sps:$4 sm:$0xff]   ;;  %v4794_v33 = vld [vmem:[#allocation2 + $0x10c] ss:$16 sps:$4 sm:$0xff]   ;;  %v4796_v34 = vld [vmem:[#allocation2 + $0x100] ss:$16 sps:$4 sm:$0xff]  }
  0x41   :  { %v4797_v35 = vld [vmem:[#allocation2 + $0x108] ss:$16 sps:$4 sm:$0xff]   ;;  %v4798_v36 = vld [vmem:[#allocation2 + $0x124] ss:$16 sps:$4 sm:$0xff]   ;;  %v4800_v37 = vld [vmem:[#allocation2 + $0x12c] ss:$16 sps:$4 sm:$0xff]  }
  0x42   :  { %v4802_v38 = vld [vmem:[#allocation2 + $0x120] ss:$16 sps:$4 sm:$0xff]   ;;  %v4803_v39 = vld [vmem:[#allocation2 + $0x128] ss:$16 sps:$4 sm:$0xff]   ;;  %v4804_v40 = vld [vmem:[#allocation2 + $0x144] ss:$16 sps:$4 sm:$0xff]  }
  0x43   :  { %1482 = vmatpush1.bf16.msra.mxu0 %v4766_v14  ;;  %1654 = vmatpush1.bf16.msra.mxu1 %v4767_v15  ;;  %v4806_v41 = vld [vmem:[#allocation2 + $0x14c] ss:$16 sps:$4 sm:$0xff]   ;;  %v4808_v42 = vld [vmem:[#allocation2 + $0x140] ss:$16 sps:$4 sm:$0xff]   ;;  %v4809_v43 = vld [vmem:[#allocation2 + $0x148] ss:$16 sps:$4 sm:$0xff]  }
  0x44   :  { %1483 = vmatprep.subr.bf16.mxu0 %v4768_v16  ;;  %1655 = vmatprep.subr.bf16.mxu1 %v4770_v17  ;;  %v4810_v44 = vld [vmem:[#allocation2 + $0x164] ss:$16 sps:$4 sm:$0xff]   ;;  %v4812_v45 = vld [vmem:[#allocation2 + $0x16c] ss:$16 sps:$4 sm:$0xff]   ;;  %v4814_v46 = vld [vmem:[#allocation2 + $0x160] ss:$16 sps:$4 sm:$0xff]  }
  0x45   :  { %v4815_v47 = vld [vmem:[#allocation2 + $0x168] ss:$16 sps:$4 sm:$0xff]   ;;  %v4842_v48 = vld [vmem:[%s5832_s0 + $0x4] ss:$28 sps:$4 sm:$0xff]   ;;  %v4818_v50 = vld [vmem:[#allocation2 + $0x18c] ss:$16 sps:$4 sm:$0xff]  }
  0x46   :  { %v4816_v49 = vld [vmem:[#allocation2 + $0x184] ss:$16 sps:$4 sm:$0xff]   ;;  %1507 = vmatprep.mubr.bf16.mxu0 %v4842_v48  ;;  %1679 = vmatprep.mubr.bf16.mxu1 %v4842_v48  ;;  %v4820_v51 = vld [vmem:[#allocation2 + $0x180] ss:$16 sps:$4 sm:$0xff]   ;;  %v4821_v52 = vld [vmem:[#allocation2 + $0x188] ss:$16 sps:$4 sm:$0xff]  }
  0x47   :  { %1484 = vmatpush1.bf16.msra.mxu0 %v4772_v18  ;;  %1656 = vmatpush1.bf16.msra.mxu1 %v4773_v19  ;;  %v4822_v53 = vld [vmem:[#allocation2 + $0x1a4] ss:$16 sps:$4 sm:$0xff]   ;;  %v4824_v54 = vld [vmem:[#allocation2 + $0x1ac] ss:$16 sps:$4 sm:$0xff]   ;;  %v4826_v55 = vld [vmem:[#allocation2 + $0x1a0] ss:$16 sps:$4 sm:$0xff]  }
  0x48   :  { %1485 = vmatprep.subr.bf16.mxu0 %v4774_v20  ;;  %1657 = vmatprep.subr.bf16.mxu1 %v4776_v21  ;;  %v4827_v56 = vld [vmem:[#allocation2 + $0x1a8] ss:$16 sps:$4 sm:$0xff]   ;;  %v4828_v57 = vld [vmem:[#allocation2 + $0x1c4] ss:$16 sps:$4 sm:$0xff]   ;;  %v4830_v58 = vld [vmem:[#allocation2 + $0x1cc] ss:$16 sps:$4 sm:$0xff]  }
  0x49   :  { %v4832_v59 = vld [vmem:[#allocation2 + $0x1c0] ss:$16 sps:$4 sm:$0xff]   ;;  %v4833_v60 = vld [vmem:[#allocation2 + $0x1c8] ss:$16 sps:$4 sm:$0xff]   ;;  %v4834_v61 = vld [vmem:[#allocation2 + $0x1e4] ss:$16 sps:$4 sm:$0xff]  }
  0x4a   :  { %v4836_v62 = vld [vmem:[#allocation2 + $0x1ec] ss:$16 sps:$4 sm:$0xff]   ;;  %v4838_v63 = vld [vmem:[#allocation2 + $0x1e0] ss:$16 sps:$4 sm:$0xff]   ;;  %v4839_v0 = vld [vmem:[#allocation2 + $0x1e8] ss:$16 sps:$4 sm:$0xff]  }
  0x4b   :  { %1486 = vmatpush1.bf16.msra.mxu0 %v4778_v22  ;;  %1658 = vmatpush1.bf16.msra.mxu1 %v4779_v23  ;;  %v4845_v1 = vld [vmem:[#allocation2 + $0x204] ss:$16 sps:$4 sm:$0xff]   ;;  %v4848_v2 = vld [vmem:[#allocation2 + $0x20c] ss:$16 sps:$4 sm:$0xff]   ;;  %v4843_v4 = vld [vmem:[#allocation2 + $0x200] ss:$16 sps:$4 sm:$0xff]  }
  0x4c   :  { %1487 = vmatprep.subr.bf16.mxu0 %v4780_v24  ;;  %1659 = vmatprep.subr.bf16.mxu1 %v4782_v25  ;;  %v4840_v3 = vld [vmem:[%s5832_s0] ss:$28 sps:$4 sm:$0xff]   ;;  %v4846_v5 = vld [vmem:[#allocation2 + $0x208] ss:$16 sps:$4 sm:$0xff]   ;;  %v4851_v6 = vld [vmem:[#allocation2 + $0x224] ss:$16 sps:$4 sm:$0xff]  }
  0x4d   :  { %v4854_v7 = vld [vmem:[#allocation2 + $0x22c] ss:$16 sps:$4 sm:$0xff]   ;;  %v4849_v8 = vld [vmem:[#allocation2 + $0x220] ss:$16 sps:$4 sm:$0xff]   ;;  %v4852_v9 = vld [vmem:[#allocation2 + $0x228] ss:$16 sps:$4 sm:$0xff]  }
  0x4e   :  { %v4857_v10 = vld [vmem:[#allocation2 + $0x244] ss:$16 sps:$4 sm:$0xff]   ;;  %v4860_v11 = vld [vmem:[#allocation2 + $0x24c] ss:$16 sps:$4 sm:$0xff]   ;;  %v4855_v12 = vld [vmem:[#allocation2 + $0x240] ss:$16 sps:$4 sm:$0xff]  }
  0x4f   :  { %1488 = vmatpush1.bf16.msra.mxu0 %v4784_v26  ;;  %1660 = vmatpush1.bf16.msra.mxu1 %v4785_v27  ;;  %v4858_v13 = vld [vmem:[#allocation2 + $0x248] ss:$16 sps:$4 sm:$0xff]   ;;  %v4863_v14 = vld [vmem:[#allocation2 + $0x264] ss:$16 sps:$4 sm:$0xff]   ;;  %v4866_v15 = vld [vmem:[#allocation2 + $0x26c] ss:$16 sps:$4 sm:$0xff]  }
  0x50   :  { %1489 = vmatprep.subr.bf16.mxu0 %v4786_v28  ;;  %1661 = vmatprep.subr.bf16.mxu1 %v4788_v29  ;;  %v4861_v16 = vld [vmem:[#allocation2 + $0x260] ss:$16 sps:$4 sm:$0xff]   ;;  %v4864_v17 = vld [vmem:[#allocation2 + $0x268] ss:$16 sps:$4 sm:$0xff]   ;;  %v4869_v18 = vld [vmem:[#allocation2 + $0x284] ss:$16 sps:$4 sm:$0xff]  }
  0x51   :  { %v4872_v19 = vld [vmem:[#allocation2 + $0x28c] ss:$16 sps:$4 sm:$0xff]   ;;  %v4867_v20 = vld [vmem:[#allocation2 + $0x280] ss:$16 sps:$4 sm:$0xff]   ;;  %v4870_v21 = vld [vmem:[#allocation2 + $0x288] ss:$16 sps:$4 sm:$0xff]  }
  0x52   :  { %v4875_v22 = vld [vmem:[#allocation2 + $0x2a4] ss:$16 sps:$4 sm:$0xff]   ;;  %v4878_v23 = vld [vmem:[#allocation2 + $0x2ac] ss:$16 sps:$4 sm:$0xff]   ;;  %v4873_v24 = vld [vmem:[#allocation2 + $0x2a0] ss:$16 sps:$4 sm:$0xff]  }
  0x53   :  { %1490 = vmatpush1.bf16.msra.mxu0 %v4790_v30  ;;  %1662 = vmatpush1.bf16.msra.mxu1 %v4791_v31  ;;  %v4876_v25 = vld [vmem:[#allocation2 + $0x2a8] ss:$16 sps:$4 sm:$0xff]   ;;  %v4881_v26 = vld [vmem:[#allocation2 + $0x2c4] ss:$16 sps:$4 sm:$0xff]   ;;  %v4884_v27 = vld [vmem:[#allocation2 + $0x2cc] ss:$16 sps:$4 sm:$0xff]  }
  0x54   :  { %1491 = vmatprep.subr.bf16.mxu0 %v4792_v32  ;;  %1663 = vmatprep.subr.bf16.mxu1 %v4794_v33  ;;  %v4879_v28 = vld [vmem:[#allocation2 + $0x2c0] ss:$16 sps:$4 sm:$0xff]   ;;  %v4882_v29 = vld [vmem:[#allocation2 + $0x2c8] ss:$16 sps:$4 sm:$0xff]   ;;  %v4887_v31 = vld [vmem:[#allocation2 + $0x2e4] ss:$16 sps:$4 sm:$0xff]  }
  0x55   :  { %v4941_v30 = vld [vmem:[%s5832_s0 + $0xc] ss:$28 sps:$4 sm:$0xff]   ;;  %v4885_v33 = vld [vmem:[#allocation2 + $0x2e0] ss:$16 sps:$4 sm:$0xff]  }
  0x56   :  { %v4890_v32 = vld [vmem:[#allocation2 + $0x2ec] ss:$16 sps:$4 sm:$0xff]  }
  0x57   :  { %1492 = vmatpush1.bf16.msra.mxu0 %v4796_v34  ;;  %1664 = vmatpush1.bf16.msra.mxu1 %v4797_v35  ;;  %v4888_v34 = vld [vmem:[#allocation2 + $0x2e8] ss:$16 sps:$4 sm:$0xff]   ;;  %v4893_v35 = vld [vmem:[#allocation2 + $0x304] ss:$16 sps:$4 sm:$0xff]   ;;  %v4914_v48 = vld [vmem:[#allocation2 + $0x36c] ss:$16 sps:$4 sm:$0xff]  }
  0x58   :  { %1493 = vmatprep.subr.bf16.mxu0 %v4798_v36  ;;  %1665 = vmatprep.subr.bf16.mxu1 %v4800_v37  ;;  %v4896_v36 = vld [vmem:[#allocation2 + $0x30c] ss:$16 sps:$4 sm:$0xff]   ;;  %v4891_v37 = vld [vmem:[#allocation2 + $0x300] ss:$16 sps:$4 sm:$0xff]  }
  0x5b   :  { %1494 = vmatpush1.bf16.msra.mxu0 %v4802_v38  ;;  %1666 = vmatpush1.bf16.msra.mxu1 %v4803_v39  ;;  %v4894_v38 = vld [vmem:[#allocation2 + $0x308] ss:$16 sps:$4 sm:$0xff]   ;;  %v4899_v39 = vld [vmem:[#allocation2 + $0x324] ss:$16 sps:$4 sm:$0xff]  }
  0x5c   :  { %1495 = vmatprep.subr.bf16.mxu0 %v4804_v40  ;;  %1667 = vmatprep.subr.bf16.mxu1 %v4806_v41  ;;  %v4902_v40 = vld [vmem:[#allocation2 + $0x32c] ss:$16 sps:$4 sm:$0xff]   ;;  %v4897_v41 = vld [vmem:[#allocation2 + $0x320] ss:$16 sps:$4 sm:$0xff]  }
  0x5f   :  { %1496 = vmatpush1.bf16.msra.mxu0 %v4808_v42  ;;  %1668 = vmatpush1.bf16.msra.mxu1 %v4809_v43  ;;  %v4900_v42 = vld [vmem:[#allocation2 + $0x328] ss:$16 sps:$4 sm:$0xff]   ;;  %v4905_v43 = vld [vmem:[#allocation2 + $0x344] ss:$16 sps:$4 sm:$0xff]  }
  0x60   :  { %1497 = vmatprep.subr.bf16.mxu0 %v4810_v44  ;;  %1669 = vmatprep.subr.bf16.mxu1 %v4812_v45  ;;  %v4908_v44 = vld [vmem:[#allocation2 + $0x34c] ss:$16 sps:$4 sm:$0xff]   ;;  %v4903_v45 = vld [vmem:[#allocation2 + $0x340] ss:$16 sps:$4 sm:$0xff]  }
  0x63   :  { %1498 = vmatpush1.bf16.msra.mxu0 %v4814_v46  ;;  %1670 = vmatpush1.bf16.msra.mxu1 %v4815_v47  ;;  %v4906_v46 = vld [vmem:[#allocation2 + $0x348] ss:$16 sps:$4 sm:$0xff]   ;;  %v4911_v47 = vld [vmem:[#allocation2 + $0x364] ss:$16 sps:$4 sm:$0xff]  }
  0x64   :  { %1499 = vmatprep.subr.bf16.mxu0 %v4816_v49  ;;  %1671 = vmatprep.subr.bf16.mxu1 %v4818_v50  ;;  %v4909_v49 = vld [vmem:[#allocation2 + $0x360] ss:$16 sps:$4 sm:$0xff]   ;;  %v4912_v50 = vld [vmem:[#allocation2 + $0x368] ss:$16 sps:$4 sm:$0xff]  }
  0x67   :  { %1500 = vmatpush1.bf16.msra.mxu0 %v4820_v51  ;;  %1672 = vmatpush1.bf16.msra.mxu1 %v4821_v52  ;;  %v4917_v51 = vld [vmem:[#allocation2 + $0x384] ss:$16 sps:$4 sm:$0xff]   ;;  %v4920_v52 = vld [vmem:[#allocation2 + $0x38c] ss:$16 sps:$4 sm:$0xff]  }
  0x68   :  { %1501 = vmatprep.subr.bf16.mxu0 %v4822_v53  ;;  %1673 = vmatprep.subr.bf16.mxu1 %v4824_v54  ;;  %v4915_v53 = vld [vmem:[#allocation2 + $0x380] ss:$16 sps:$4 sm:$0xff]   ;;  %v4918_v54 = vld [vmem:[#allocation2 + $0x388] ss:$16 sps:$4 sm:$0xff]  }
  0x6b   :  { %1502 = vmatpush1.bf16.msra.mxu0 %v4826_v55  ;;  %1674 = vmatpush1.bf16.msra.mxu1 %v4827_v56  ;;  %v4923_v55 = vld [vmem:[#allocation2 + $0x3a4] ss:$16 sps:$4 sm:$0xff]   ;;  %v4926_v56 = vld [vmem:[#allocation2 + $0x3ac] ss:$16 sps:$4 sm:$0xff]  }
  0x6c   :  { %1503 = vmatprep.subr.bf16.mxu0 %v4828_v57  ;;  %1675 = vmatprep.subr.bf16.mxu1 %v4830_v58  ;;  %v4921_v57 = vld [vmem:[#allocation2 + $0x3a0] ss:$16 sps:$4 sm:$0xff]   ;;  %v4924_v58 = vld [vmem:[#allocation2 + $0x3a8] ss:$16 sps:$4 sm:$0xff]  }
  0x6f   :  { %1504 = vmatpush1.bf16.msra.mxu0 %v4832_v59  ;;  %1676 = vmatpush1.bf16.msra.mxu1 %v4833_v60  ;;  %v4929_v59 = vld [vmem:[#allocation2 + $0x3c4] ss:$16 sps:$4 sm:$0xff]   ;;  %v4932_v60 = vld [vmem:[#allocation2 + $0x3cc] ss:$16 sps:$4 sm:$0xff]  }
  0x70   :  { %1505 = vmatprep.subr.bf16.mxu0 %v4834_v61  ;;  %1677 = vmatprep.subr.bf16.mxu1 %v4836_v62  ;;  %v4927_v61 = vld [vmem:[#allocation2 + $0x3c0] ss:$16 sps:$4 sm:$0xff]   ;;  %v4930_v62 = vld [vmem:[#allocation2 + $0x3c8] ss:$16 sps:$4 sm:$0xff]  }
  0x73   :  { %1506 = vmatpush1.bf16.msra.mxu0 %v4838_v63  ;;  %1678 = vmatpush1.bf16.msra.mxu1 %v4839_v0  ;;  %v4935_v63 = vld [vmem:[#allocation2 + $0x3e4] ss:$16 sps:$4 sm:$0xff]   ;;  %v4938_v0 = vld [vmem:[#allocation2 + $0x3ec] ss:$16 sps:$4 sm:$0xff]  }
  0x74   :  { %1518 = vmatprep.subr.bf16.mxu0 %v4845_v1  ;;  %1690 = vmatprep.subr.bf16.mxu1 %v4848_v2  ;;  %v4933_v1 = vld [vmem:[#allocation2 + $0x3e0] ss:$16 sps:$4 sm:$0xff]   ;;  %v4936_v2 = vld [vmem:[#allocation2 + $0x3e8] ss:$16 sps:$4 sm:$0xff]  }
  0x76   :  { %1508 = vmatmul.mubr.bf16.vlgmr.msra.gmra.mrb[0].mxu0 %v4840_v3  ;;  %1680 = vmatmul.mubr.bf16.vlgmr.msra.gmra.mrb[0].mxu1 %v4840_v3  ;;  %v4944_v3 = vld [vmem:[#allocation2 + $0x404] ss:$16 sps:$4 sm:$0xff]  }
  0x77   :  { %1519 = vmatpush1.bf16.msra.mxu0 %v4843_v4  ;;  %1691 = vmatpush1.bf16.msra.mxu1 %v4846_v5  ;;  %v4947_v4 = vld [vmem:[#allocation2 + $0x40c] ss:$16 sps:$4 sm:$0xff]   ;;  %v4939_v5 = vld [vmem:[%s5832_s0 + $0x8] ss:$28 sps:$4 sm:$0xff]  }
  0x78   :  { %1520 = vmatprep.subr.bf16.mxu0 %v4851_v6  ;;  %1692 = vmatprep.subr.bf16.mxu1 %v4854_v7  ;;  %v4942_v6 = vld [vmem:[#allocation2 + $0x400] ss:$16 sps:$4 sm:$0xff]   ;;  %v4945_v7 = vld [vmem:[#allocation2 + $0x408] ss:$16 sps:$4 sm:$0xff]  }
  0x79   :  { %1550 = vmatprep.mubr.bf16.mxu0 %v4941_v30  ;;  %1722 = vmatprep.mubr.bf16.mxu1 %v4941_v30  ;;  %v4983_v30 = vld [vmem:[#allocation2 + $0x4cc] ss:$16 sps:$4 sm:$0xff]  }
  0x7b   :  { %1521 = vmatpush1.bf16.msra.mxu0 %v4849_v8  ;;  %1693 = vmatpush1.bf16.msra.mxu1 %v4852_v9  ;;  %v4950_v8 = vld [vmem:[#allocation2 + $0x424] ss:$16 sps:$4 sm:$0xff]   ;;  %v4953_v9 = vld [vmem:[#allocation2 + $0x42c] ss:$16 sps:$4 sm:$0xff]  }
  0x7c   :  { %1522 = vmatprep.subr.bf16.mxu0 %v4857_v10  ;;  %1694 = vmatprep.subr.bf16.mxu1 %v4860_v11  ;;  %v4948_v10 = vld [vmem:[#allocation2 + $0x420] ss:$16 sps:$4 sm:$0xff]   ;;  %v4951_v11 = vld [vmem:[#allocation2 + $0x428] ss:$16 sps:$4 sm:$0xff]  }
  0x7f   :  { %1523 = vmatpush1.bf16.msra.mxu0 %v4855_v12  ;;  %1695 = vmatpush1.bf16.msra.mxu1 %v4858_v13  ;;  %v5040_v12 = vld [vmem:[%s5832_s0 + $0x14] ss:$28 sps:$4 sm:$0xff]  }
  0x80   :  { %1524 = vmatprep.subr.bf16.mxu0 %v4863_v14  ;;  %1696 = vmatprep.subr.bf16.mxu1 %v4866_v15  ;;  %v4956_v13 = vld [vmem:[#allocation2 + $0x444] ss:$16 sps:$4 sm:$0xff]   ;;  %v4959_v14 = vld [vmem:[#allocation2 + $0x44c] ss:$16 sps:$4 sm:$0xff]   ;;  %v4954_v15 = vld [vmem:[#allocation2 + $0x440] ss:$16 sps:$4 sm:$0xff]  }
  0x83   :  { %1525 = vmatpush1.bf16.msra.mxu0 %v4861_v16  ;;  %1697 = vmatpush1.bf16.msra.mxu1 %v4864_v17  ;;  %v4957_v16 = vld [vmem:[#allocation2 + $0x448] ss:$16 sps:$4 sm:$0xff]   ;;  %v4962_v17 = vld [vmem:[#allocation2 + $0x464] ss:$16 sps:$4 sm:$0xff]  }
  0x84   :  { %1526 = vmatprep.subr.bf16.mxu0 %v4869_v18  ;;  %1698 = vmatprep.subr.bf16.mxu1 %v4872_v19  ;;  %v4965_v18 = vld [vmem:[#allocation2 + $0x46c] ss:$16 sps:$4 sm:$0xff]   ;;  %v4960_v19 = vld [vmem:[#allocation2 + $0x460] ss:$16 sps:$4 sm:$0xff]  }
  0x87   :  { %1527 = vmatpush1.bf16.msra.mxu0 %v4867_v20  ;;  %1699 = vmatpush1.bf16.msra.mxu1 %v4870_v21  ;;  %v4963_v20 = vld [vmem:[#allocation2 + $0x468] ss:$16 sps:$4 sm:$0xff]   ;;  %v4968_v21 = vld [vmem:[#allocation2 + $0x484] ss:$16 sps:$4 sm:$0xff]  }
  0x88   :  { %1528 = vmatprep.subr.bf16.mxu0 %v4875_v22  ;;  %1700 = vmatprep.subr.bf16.mxu1 %v4878_v23  ;;  %v4971_v22 = vld [vmem:[#allocation2 + $0x48c] ss:$16 sps:$4 sm:$0xff]   ;;  %v4966_v23 = vld [vmem:[#allocation2 + $0x480] ss:$16 sps:$4 sm:$0xff]  }
  0x8b   :  { %1529 = vmatpush1.bf16.msra.mxu0 %v4873_v24  ;;  %1701 = vmatpush1.bf16.msra.mxu1 %v4876_v25  ;;  %v4969_v24 = vld [vmem:[#allocation2 + $0x488] ss:$16 sps:$4 sm:$0xff]   ;;  %v4974_v25 = vld [vmem:[#allocation2 + $0x4a4] ss:$16 sps:$4 sm:$0xff]  }
  0x8c   :  { %1530 = vmatprep.subr.bf16.mxu0 %v4881_v26  ;;  %1702 = vmatprep.subr.bf16.mxu1 %v4884_v27  ;;  %v4977_v26 = vld [vmem:[#allocation2 + $0x4ac] ss:$16 sps:$4 sm:$0xff]   ;;  %v4972_v27 = vld [vmem:[#allocation2 + $0x4a0] ss:$16 sps:$4 sm:$0xff]  }
  0x8f   :  { %1531 = vmatpush1.bf16.msra.mxu0 %v4879_v28  ;;  %1703 = vmatpush1.bf16.msra.mxu1 %v4882_v29  ;;  %v4975_v28 = vld [vmem:[#allocation2 + $0x4a8] ss:$16 sps:$4 sm:$0xff]   ;;  %v4980_v29 = vld [vmem:[#allocation2 + $0x4c4] ss:$16 sps:$4 sm:$0xff]  }
  0x90   :  { %1532 = vmatprep.subr.bf16.mxu0 %v4887_v31  ;;  %1704 = vmatprep.subr.bf16.mxu1 %v4890_v32  ;;  %v4978_v31 = vld [vmem:[#allocation2 + $0x4c0] ss:$16 sps:$4 sm:$0xff]   ;;  %v4981_v32 = vld [vmem:[#allocation2 + $0x4c8] ss:$16 sps:$4 sm:$0xff]  }
  0x93   :  { %1533 = vmatpush1.bf16.msra.mxu0 %v4885_v33  ;;  %1705 = vmatpush1.bf16.msra.mxu1 %v4888_v34  ;;  %v4986_v33 = vld [vmem:[#allocation2 + $0x4e4] ss:$16 sps:$4 sm:$0xff]   ;;  %v4989_v34 = vld [vmem:[#allocation2 + $0x4ec] ss:$16 sps:$4 sm:$0xff]  }
  0x94   :  { %1534 = vmatprep.subr.bf16.mxu0 %v4893_v35  ;;  %1706 = vmatprep.subr.bf16.mxu1 %v4896_v36  ;;  %v4984_v35 = vld [vmem:[#allocation2 + $0x4e0] ss:$16 sps:$4 sm:$0xff]   ;;  %v4987_v36 = vld [vmem:[#allocation2 + $0x4e8] ss:$16 sps:$4 sm:$0xff]  }
  0x97   :  { %1535 = vmatpush1.bf16.msra.mxu0 %v4891_v37  ;;  %1707 = vmatpush1.bf16.msra.mxu1 %v4894_v38  ;;  %v4992_v37 = vld [vmem:[#allocation2 + $0x504] ss:$16 sps:$4 sm:$0xff]   ;;  %v4995_v38 = vld [vmem:[#allocation2 + $0x50c] ss:$16 sps:$4 sm:$0xff]  }
  0x98   :  { %1536 = vmatprep.subr.bf16.mxu0 %v4899_v39  ;;  %1708 = vmatprep.subr.bf16.mxu1 %v4902_v40  ;;  %v4990_v39 = vld [vmem:[#allocation2 + $0x500] ss:$16 sps:$4 sm:$0xff]   ;;  %v4993_v40 = vld [vmem:[#allocation2 + $0x508] ss:$16 sps:$4 sm:$0xff]  }
  0x9b   :  { %1537 = vmatpush1.bf16.msra.mxu0 %v4897_v41  ;;  %1709 = vmatpush1.bf16.msra.mxu1 %v4900_v42  ;;  %v4998_v41 = vld [vmem:[#allocation2 + $0x524] ss:$16 sps:$4 sm:$0xff]   ;;  %v5001_v42 = vld [vmem:[#allocation2 + $0x52c] ss:$16 sps:$4 sm:$0xff]  }
  0x9c   :  { %1538 = vmatprep.subr.bf16.mxu0 %v4905_v43  ;;  %1710 = vmatprep.subr.bf16.mxu1 %v4908_v44  ;;  %v4996_v43 = vld [vmem:[#allocation2 + $0x520] ss:$16 sps:$4 sm:$0xff]   ;;  %v4999_v44 = vld [vmem:[#allocation2 + $0x528] ss:$16 sps:$4 sm:$0xff]  }
  0x9f   :  { %1539 = vmatpush1.bf16.msra.mxu0 %v4903_v45  ;;  %1711 = vmatpush1.bf16.msra.mxu1 %v4906_v46  ;;  %v5004_v45 = vld [vmem:[#allocation2 + $0x544] ss:$16 sps:$4 sm:$0xff]   ;;  %v5007_v46 = vld [vmem:[#allocation2 + $0x54c] ss:$16 sps:$4 sm:$0xff]  }
  0xa0   :  { %1540 = vmatprep.subr.bf16.mxu0 %v4911_v47  ;;  %1712 = vmatprep.subr.bf16.mxu1 %v4914_v48  ;;  %v5002_v47 = vld [vmem:[#allocation2 + $0x540] ss:$16 sps:$4 sm:$0xff]   ;;  %v5005_v48 = vld [vmem:[#allocation2 + $0x548] ss:$16 sps:$4 sm:$0xff]  }
  0xa3   :  { %1541 = vmatpush1.bf16.msra.mxu0 %v4909_v49  ;;  %1713 = vmatpush1.bf16.msra.mxu1 %v4912_v50  ;;  %v5010_v49 = vld [vmem:[#allocation2 + $0x564] ss:$16 sps:$4 sm:$0xff]   ;;  %v5013_v50 = vld [vmem:[#allocation2 + $0x56c] ss:$16 sps:$4 sm:$0xff]  }
  0xa4   :  { %1542 = vmatprep.subr.bf16.mxu0 %v4917_v51  ;;  %1714 = vmatprep.subr.bf16.mxu1 %v4920_v52  ;;  %v5008_v51 = vld [vmem:[#allocation2 + $0x560] ss:$16 sps:$4 sm:$0xff]   ;;  %v5011_v52 = vld [vmem:[#allocation2 + $0x568] ss:$16 sps:$4 sm:$0xff]  }
  0xa7   :  { %1543 = vmatpush1.bf16.msra.mxu0 %v4915_v53  ;;  %1715 = vmatpush1.bf16.msra.mxu1 %v4918_v54  ;;  %v5016_v53 = vld [vmem:[#allocation2 + $0x584] ss:$16 sps:$4 sm:$0xff]   ;;  %v5019_v54 = vld [vmem:[#allocation2 + $0x58c] ss:$16 sps:$4 sm:$0xff]  }
  0xa8   :  { %1544 = vmatprep.subr.bf16.mxu0 %v4923_v55  ;;  %1716 = vmatprep.subr.bf16.mxu1 %v4926_v56  ;;  %v5014_v55 = vld [vmem:[#allocation2 + $0x580] ss:$16 sps:$4 sm:$0xff]   ;;  %v5017_v56 = vld [vmem:[#allocation2 + $0x588] ss:$16 sps:$4 sm:$0xff]  }
  0xab   :  { %1545 = vmatpush1.bf16.msra.mxu0 %v4921_v57  ;;  %1717 = vmatpush1.bf16.msra.mxu1 %v4924_v58  ;;  %v5022_v57 = vld [vmem:[#allocation2 + $0x5a4] ss:$16 sps:$4 sm:$0xff]   ;;  %v5025_v58 = vld [vmem:[#allocation2 + $0x5ac] ss:$16 sps:$4 sm:$0xff]  }
  0xac   :  { %1546 = vmatprep.subr.bf16.mxu0 %v4929_v59  ;;  %1718 = vmatprep.subr.bf16.mxu1 %v4932_v60  ;;  %v5020_v59 = vld [vmem:[#allocation2 + $0x5a0] ss:$16 sps:$4 sm:$0xff]   ;;  %v5023_v60 = vld [vmem:[#allocation2 + $0x5a8] ss:$16 sps:$4 sm:$0xff]  }
  0xaf   :  { %1547 = vmatpush1.bf16.msra.mxu0 %v4927_v61  ;;  %1719 = vmatpush1.bf16.msra.mxu1 %v4930_v62  ;;  %v5028_v61 = vld [vmem:[#allocation2 + $0x5c4] ss:$16 sps:$4 sm:$0xff]   ;;  %v5031_v62 = vld [vmem:[#allocation2 + $0x5cc] ss:$16 sps:$4 sm:$0xff]  }
  0xb0   :  { %1548 = vmatprep.subr.bf16.mxu0 %v4935_v63  ;;  %1720 = vmatprep.subr.bf16.mxu1 %v4938_v0  ;;  %v5026_v63 = vld [vmem:[#allocation2 + $0x5c0] ss:$16 sps:$4 sm:$0xff]   ;;  %v5029_v0 = vld [vmem:[#allocation2 + $0x5c8] ss:$16 sps:$4 sm:$0xff]  }
  0xb3   :  { %1549 = vmatpush1.bf16.msra.mxu0 %v4933_v1  ;;  %1721 = vmatpush1.bf16.msra.mxu1 %v4936_v2  ;;  %v5034_v1 = vld [vmem:[#allocation2 + $0x5e4] ss:$16 sps:$4 sm:$0xff]   ;;  %v5037_v2 = vld [vmem:[#allocation2 + $0x5ec] ss:$16 sps:$4 sm:$0xff]  }
  0xb4   :  { %1561 = vmatprep.subr.bf16.mxu0 %v4944_v3  ;;  %1733 = vmatprep.subr.bf16.mxu1 %v4947_v4  ;;  %v5032_v3 = vld [vmem:[#allocation2 + $0x5e0] ss:$16 sps:$4 sm:$0xff]   ;;  %v5035_v4 = vld [vmem:[#allocation2 + $0x5e8] ss:$16 sps:$4 sm:$0xff]  }
  0xb6   :  { %1551 = vmatmul.mubr.bf16.vlgmr.msra.gmra.mrb[0].mxu0 %v4939_v5  ;;  %1723 = vmatmul.mubr.bf16.vlgmr.msra.gmra.mrb[0].mxu1 %v4939_v5  ;;  %v5043_v5 = vld [vmem:[#allocation2 + $0x604] ss:$16 sps:$4 sm:$0xff]  }
  0xb7   :  { %1562 = vmatpush1.bf16.msra.mxu0 %v4942_v6  ;;  %1734 = vmatpush1.bf16.msra.mxu1 %v4945_v7  ;;  %v5038_v6 = vld [vmem:[%s5832_s0 + $0x10] ss:$28 sps:$4 sm:$0xff]  }
  0xb8   :  { %1563 = vmatprep.subr.bf16.mxu0 %v4950_v8  ;;  %1735 = vmatprep.subr.bf16.mxu1 %v4953_v9  ;;  %v5046_v7 = vld [vmem:[#allocation2 + $0x60c] ss:$16 sps:$4 sm:$0xff]   ;;  %v5041_v8 = vld [vmem:[#allocation2 + $0x600] ss:$16 sps:$4 sm:$0xff]   ;;  %v5044_v9 = vld [vmem:[#allocation2 + $0x608] ss:$16 sps:$4 sm:$0xff]  }
  0xb9   :  { %1593 = vmatprep.mubr.bf16.mxu0 %v5040_v12  ;;  %1765 = vmatprep.mubr.bf16.mxu1 %v5040_v12  ;;  %v5047_v12 = vld [vmem:[#allocation2 + $0x620] ss:$16 sps:$4 sm:$0xff]  }
  0xbb   :  { %1564 = vmatpush1.bf16.msra.mxu0 %v4948_v10  ;;  %1736 = vmatpush1.bf16.msra.mxu1 %v4951_v11  ;;  %v5049_v10 = vld [vmem:[#allocation2 + $0x624] ss:$16 sps:$4 sm:$0xff]   ;;  %v5052_v11 = vld [vmem:[#allocation2 + $0x62c] ss:$16 sps:$4 sm:$0xff]  }
  0xbc   :  { %1565 = vmatprep.subr.bf16.mxu0 %v4956_v13  ;;  %1737 = vmatprep.subr.bf16.mxu1 %v4959_v14  ;;  %v5050_v13 = vld [vmem:[#allocation2 + $0x628] ss:$16 sps:$4 sm:$0xff]   ;;  %v5055_v14 = vld [vmem:[#allocation2 + $0x644] ss:$16 sps:$4 sm:$0xff]  }
  0xbf   :  { %1566 = vmatpush1.bf16.msra.mxu0 %v4954_v15  ;;  %1738 = vmatpush1.bf16.msra.mxu1 %v4957_v16  ;;  %v5058_v15 = vld [vmem:[#allocation2 + $0x64c] ss:$16 sps:$4 sm:$0xff]   ;;  %v5053_v16 = vld [vmem:[#allocation2 + $0x640] ss:$16 sps:$4 sm:$0xff]  }
  0xc0   :  { %1567 = vmatprep.subr.bf16.mxu0 %v4962_v17  ;;  %1739 = vmatprep.subr.bf16.mxu1 %v4965_v18  ;;  %v5056_v17 = vld [vmem:[#allocation2 + $0x648] ss:$16 sps:$4 sm:$0xff]   ;;  %v5581_v18 = vmov 0  }
  0xc3   :  { %1568 = vmatpush1.bf16.msra.mxu0 %v4960_v19  ;;  %1740 = vmatpush1.bf16.msra.mxu1 %v4963_v20  ;;  %v5061_v19 = vld [vmem:[#allocation2 + $0x664] ss:$16 sps:$4 sm:$0xff]   ;;  %v5064_v20 = vld [vmem:[#allocation2 + $0x66c] ss:$16 sps:$4 sm:$0xff]  }
  0xc4   :  { %1569 = vmatprep.subr.bf16.mxu0 %v4968_v21  ;;  %1741 = vmatprep.subr.bf16.mxu1 %v4971_v22  ;;  %v5059_v21 = vld [vmem:[#allocation2 + $0x660] ss:$16 sps:$4 sm:$0xff]   ;;  %v5062_v22 = vld [vmem:[#allocation2 + $0x668] ss:$16 sps:$4 sm:$0xff]  }
  0xc7   :  { %1570 = vmatpush1.bf16.msra.mxu0 %v4966_v23  ;;  %1742 = vmatpush1.bf16.msra.mxu1 %v4969_v24  ;;  %v5067_v23 = vld [vmem:[#allocation2 + $0x684] ss:$16 sps:$4 sm:$0xff]   ;;  %v5070_v24 = vld [vmem:[#allocation2 + $0x68c] ss:$16 sps:$4 sm:$0xff]  }
  0xc8   :  { %1571 = vmatprep.subr.bf16.mxu0 %v4974_v25  ;;  %1743 = vmatprep.subr.bf16.mxu1 %v4977_v26  ;;  %v5065_v25 = vld [vmem:[#allocation2 + $0x680] ss:$16 sps:$4 sm:$0xff]   ;;  %v5068_v26 = vld [vmem:[#allocation2 + $0x688] ss:$16 sps:$4 sm:$0xff]  }
  0xcb   :  { %1572 = vmatpush1.bf16.msra.mxu0 %v4972_v27  ;;  %1744 = vmatpush1.bf16.msra.mxu1 %v4975_v28  ;;  %v5073_v27 = vld [vmem:[#allocation2 + $0x6a4] ss:$16 sps:$4 sm:$0xff]   ;;  %v5076_v28 = vld [vmem:[#allocation2 + $0x6ac] ss:$16 sps:$4 sm:$0xff]  }
  0xcc   :  { %1573 = vmatprep.subr.bf16.mxu0 %v4980_v29  ;;  %1745 = vmatprep.subr.bf16.mxu1 %v4983_v30  ;;  %v5071_v29 = vld [vmem:[#allocation2 + $0x6a0] ss:$16 sps:$4 sm:$0xff]   ;;  %v5074_v30 = vld [vmem:[#allocation2 + $0x6a8] ss:$16 sps:$4 sm:$0xff]  }
  0xcf   :  { %1574 = vmatpush1.bf16.msra.mxu0 %v4978_v31  ;;  %1746 = vmatpush1.bf16.msra.mxu1 %v4981_v32  ;;  %v5079_v31 = vld [vmem:[#allocation2 + $0x6c4] ss:$16 sps:$4 sm:$0xff]   ;;  %v5082_v32 = vld [vmem:[#allocation2 + $0x6cc] ss:$16 sps:$4 sm:$0xff]  }
  0xd0   :  { %1575 = vmatprep.subr.bf16.mxu0 %v4986_v33  ;;  %1747 = vmatprep.subr.bf16.mxu1 %v4989_v34  ;;  %v5077_v33 = vld [vmem:[#allocation2 + $0x6c0] ss:$16 sps:$4 sm:$0xff]   ;;  %v5080_v34 = vld [vmem:[#allocation2 + $0x6c8] ss:$16 sps:$4 sm:$0xff]  }
  0xd3   :  { %1576 = vmatpush1.bf16.msra.mxu0 %v4984_v35  ;;  %1748 = vmatpush1.bf16.msra.mxu1 %v4987_v36  ;;  %v5085_v35 = vld [vmem:[#allocation2 + $0x6e4] ss:$16 sps:$4 sm:$0xff]   ;;  %v5088_v36 = vld [vmem:[#allocation2 + $0x6ec] ss:$16 sps:$4 sm:$0xff]  }
  0xd4   :  { %1577 = vmatprep.subr.bf16.mxu0 %v4992_v37  ;;  %1749 = vmatprep.subr.bf16.mxu1 %v4995_v38  ;;  %v5083_v37 = vld [vmem:[#allocation2 + $0x6e0] ss:$16 sps:$4 sm:$0xff]   ;;  %v5086_v38 = vld [vmem:[#allocation2 + $0x6e8] ss:$16 sps:$4 sm:$0xff]  }
  0xd7   :  { %1578 = vmatpush1.bf16.msra.mxu0 %v4990_v39  ;;  %1750 = vmatpush1.bf16.msra.mxu1 %v4993_v40  ;;  %v5092_v39 = vld [vmem:[#allocation4 + $0x4] ss:$16 sps:$4 sm:$0xff]   ;;  %v5095_v40 = vld [vmem:[#allocation4 + $0xc] ss:$16 sps:$4 sm:$0xff]  }
  0xd8   :  { %1579 = vmatprep.subr.bf16.mxu0 %v4998_v41  ;;  %1751 = vmatprep.subr.bf16.mxu1 %v5001_v42  ;;  %v5089_v41 = vld [vmem:[%s5832_s0 + $0x18] ss:$28 sps:$4 sm:$0xff]   ;;  %v5090_v42 = vld [vmem:[#allocation4] ss:$16 sps:$4 sm:$0xff]  }
  0xdb   :  { %1580 = vmatpush1.bf16.msra.mxu0 %v4996_v43  ;;  %1752 = vmatpush1.bf16.msra.mxu1 %v4999_v44  ;;  %v5093_v43 = vld [vmem:[#allocation4 + $0x8] ss:$16 sps:$4 sm:$0xff]   ;;  %v5098_v44 = vld [vmem:[#allocation4 + $0x24] ss:$16 sps:$4 sm:$0xff]  }
  0xdc   :  { %1581 = vmatprep.subr.bf16.mxu0 %v5004_v45  ;;  %1753 = vmatprep.subr.bf16.mxu1 %v5007_v46  ;;  %v5101_v45 = vld [vmem:[#allocation4 + $0x2c] ss:$16 sps:$4 sm:$0xff]   ;;  %v5096_v46 = vld [vmem:[#allocation4 + $0x20] ss:$16 sps:$4 sm:$0xff]  }
  0xdf   :  { %1582 = vmatpush1.bf16.msra.mxu0 %v5002_v47  ;;  %1754 = vmatpush1.bf16.msra.mxu1 %v5005_v48  ;;  %v5099_v47 = vld [vmem:[#allocation4 + $0x28] ss:$16 sps:$4 sm:$0xff]   ;;  %v5104_v48 = vld [vmem:[#allocation4 + $0x44] ss:$16 sps:$4 sm:$0xff]  }
  0xe0   :  { %1583 = vmatprep.subr.bf16.mxu0 %v5010_v49  ;;  %1755 = vmatprep.subr.bf16.mxu1 %v5013_v50  ;;  %v5107_v49 = vld [vmem:[#allocation4 + $0x4c] ss:$16 sps:$4 sm:$0xff]   ;;  %v5102_v50 = vld [vmem:[#allocation4 + $0x40] ss:$16 sps:$4 sm:$0xff]  }
  0xe3   :  { %1584 = vmatpush1.bf16.msra.mxu0 %v5008_v51  ;;  %1756 = vmatpush1.bf16.msra.mxu1 %v5011_v52  ;;  %v5105_v51 = vld [vmem:[#allocation4 + $0x48] ss:$16 sps:$4 sm:$0xff]   ;;  %v5110_v52 = vld [vmem:[#allocation4 + $0x64] ss:$16 sps:$4 sm:$0xff]  }
  0xe4   :  { %1585 = vmatprep.subr.bf16.mxu0 %v5016_v53  ;;  %1757 = vmatprep.subr.bf16.mxu1 %v5019_v54  ;;  %v5113_v53 = vld [vmem:[#allocation4 + $0x6c] ss:$16 sps:$4 sm:$0xff]   ;;  %v5108_v54 = vld [vmem:[#allocation4 + $0x60] ss:$16 sps:$4 sm:$0xff]  }
  0xe7   :  { %1586 = vmatpush1.bf16.msra.mxu0 %v5014_v55  ;;  %1758 = vmatpush1.bf16.msra.mxu1 %v5017_v56  ;;  %v5111_v55 = vld [vmem:[#allocation4 + $0x68] ss:$16 sps:$4 sm:$0xff]   ;;  %v5116_v56 = vld [vmem:[#allocation4 + $0x84] ss:$16 sps:$4 sm:$0xff]  }
  0xe8   :  { %1587 = vmatprep.subr.bf16.mxu0 %v5022_v57  ;;  %1759 = vmatprep.subr.bf16.mxu1 %v5025_v58  ;;  %v5119_v57 = vld [vmem:[#allocation4 + $0x8c] ss:$16 sps:$4 sm:$0xff]   ;;  %v5114_v58 = vld [vmem:[#allocation4 + $0x80] ss:$16 sps:$4 sm:$0xff]  }
  0xeb   :  { %1588 = vmatpush1.bf16.msra.mxu0 %v5020_v59  ;;  %1760 = vmatpush1.bf16.msra.mxu1 %v5023_v60  ;;  %v5117_v59 = vld [vmem:[#allocation4 + $0x88] ss:$16 sps:$4 sm:$0xff]   ;;  %v5122_v60 = vld [vmem:[#allocation4 + $0xa4] ss:$16 sps:$4 sm:$0xff]  }
  0xec   :  { %1589 = vmatprep.subr.bf16.mxu0 %v5028_v61  ;;  %1761 = vmatprep.subr.bf16.mxu1 %v5031_v62  ;;  %v5125_v61 = vld [vmem:[#allocation4 + $0xac] ss:$16 sps:$4 sm:$0xff]   ;;  %v5120_v62 = vld [vmem:[#allocation4 + $0xa0] ss:$16 sps:$4 sm:$0xff]  }
  0xef   :  { %1590 = vmatpush1.bf16.msra.mxu0 %v5026_v63  ;;  %1762 = vmatpush1.bf16.msra.mxu1 %v5029_v0  ;;  %v5123_v63 = vld [vmem:[#allocation4 + $0xa8] ss:$16 sps:$4 sm:$0xff]   ;;  %v5128_v0 = vld [vmem:[#allocation4 + $0xc4] ss:$16 sps:$4 sm:$0xff]  }
  0xf0   :  { %1591 = vmatprep.subr.bf16.mxu0 %v5034_v1  ;;  %1763 = vmatprep.subr.bf16.mxu1 %v5037_v2  ;;  %v5131_v1 = vld [vmem:[#allocation4 + $0xcc] ss:$16 sps:$4 sm:$0xff]   ;;  %v5126_v2 = vld [vmem:[#allocation4 + $0xc0] ss:$16 sps:$4 sm:$0xff]  }
  0xf3   :  { %1592 = vmatpush1.bf16.msra.mxu0 %v5032_v3  ;;  %1764 = vmatpush1.bf16.msra.mxu1 %v5035_v4  ;;  %v5129_v3 = vld [vmem:[#allocation4 + $0xc8] ss:$16 sps:$4 sm:$0xff]   ;;  %v5134_v4 = vld [vmem:[#allocation4 + $0xe4] ss:$16 sps:$4 sm:$0xff]  }
  0xf4   :  { %1604 = vmatprep.subr.bf16.mxu0 %v5043_v5  ;;  %1776 = vmatprep.subr.bf16.mxu1 %v5046_v7  ;;  %v5137_v5 = vld [vmem:[#allocation4 + $0xec] ss:$16 sps:$4 sm:$0xff]   ;;  %v5135_v7 = vld [vmem:[#allocation4 + $0xe8] ss:$16 sps:$4 sm:$0xff]  }
  0xf6   :  { %1594 = vmatmul.mubr.bf16.vlgmr.msra.gmra.mrb[0].mxu0 %v5038_v6  ;;  %1766 = vmatmul.mubr.bf16.vlgmr.msra.gmra.mrb[0].mxu1 %v5038_v6  ;;  %v5132_v6 = vld [vmem:[#allocation4 + $0xe0] ss:$16 sps:$4 sm:$0xff]  }
  0xf7   :  { %1605 = vmatpush1.bf16.msra.mxu0 %v5041_v8  ;;  %1777 = vmatpush1.bf16.msra.mxu1 %v5044_v9  ;;  %v5140_v8 = vld [vmem:[#allocation4 + $0x104] ss:$16 sps:$4 sm:$0xff]   ;;  %v5143_v9 = vld [vmem:[#allocation4 + $0x10c] ss:$16 sps:$4 sm:$0xff]  }
  0xf8   :  { %1606 = vmatprep.subr.bf16.mxu0 %v5049_v10  ;;  %1778 = vmatprep.subr.bf16.mxu1 %v5052_v11  ;;  %v5138_v10 = vld [vmem:[#allocation4 + $0x100] ss:$16 sps:$4 sm:$0xff]   ;;  %v5141_v11 = vld [vmem:[#allocation4 + $0x108] ss:$16 sps:$4 sm:$0xff]  }
  0xf9   :  { %1636 = vmatprep.mubr.bf16.mxu0 %v5581_v18  ;;  %1808 = vmatprep.mubr.bf16.mxu1 %v5581_v18  ;;  %v5150_v18 = vld [vmem:[#allocation4 + $0x140] ss:$16 sps:$4 sm:$0xff]  }
  0xfb   :  { %1607 = vmatpush1.bf16.msra.mxu0 %v5047_v12  ;;  %1779 = vmatpush1.bf16.msra.mxu1 %v5050_v13  ;;  %v5146_v12 = vld [vmem:[#allocation4 + $0x124] ss:$16 sps:$4 sm:$0xff]   ;;  %v5149_v13 = vld [vmem:[#allocation4 + $0x12c] ss:$16 sps:$4 sm:$0xff]  }
  0xfc   :  { %1608 = vmatprep.subr.bf16.mxu0 %v5055_v14  ;;  %1780 = vmatprep.subr.bf16.mxu1 %v5058_v15  ;;  %v5144_v14 = vld [vmem:[#allocation4 + $0x120] ss:$16 sps:$4 sm:$0xff]   ;;  %v5147_v15 = vld [vmem:[#allocation4 + $0x128] ss:$16 sps:$4 sm:$0xff]  }
  0xff   :  { %1609 = vmatpush1.bf16.msra.mxu0 %v5053_v16  ;;  %1781 = vmatpush1.bf16.msra.mxu1 %v5056_v17  ;;  %v5152_v16 = vld [vmem:[#allocation4 + $0x144] ss:$16 sps:$4 sm:$0xff]   ;;  %v5155_v17 = vld [vmem:[#allocation4 + $0x14c] ss:$16 sps:$4 sm:$0xff]  }
 0x100   :  { %1610 = vmatprep.subr.bf16.mxu0 %v5061_v19  ;;  %1782 = vmatprep.subr.bf16.mxu1 %v5064_v20  ;;  %v5153_v19 = vld [vmem:[#allocation4 + $0x148] ss:$16 sps:$4 sm:$0xff]   ;;  %v5158_v20 = vld [vmem:[#allocation4 + $0x164] ss:$16 sps:$4 sm:$0xff]  }
 0x103   :  { %1611 = vmatpush1.bf16.msra.mxu0 %v5059_v21  ;;  %1783 = vmatpush1.bf16.msra.mxu1 %v5062_v22  ;;  %v5161_v21 = vld [vmem:[#allocation4 + $0x16c] ss:$16 sps:$4 sm:$0xff]   ;;  %v5156_v22 = vld [vmem:[#allocation4 + $0x160] ss:$16 sps:$4 sm:$0xff]  }
 0x104   :  { %1612 = vmatprep.subr.bf16.mxu0 %v5067_v23  ;;  %1784 = vmatprep.subr.bf16.mxu1 %v5070_v24  ;;  %v5159_v23 = vld [vmem:[#allocation4 + $0x168] ss:$16 sps:$4 sm:$0xff]   ;;  %v5164_v24 = vld [vmem:[#allocation4 + $0x184] ss:$16 sps:$4 sm:$0xff]  }
 0x107   :  { %1613 = vmatpush1.bf16.msra.mxu0 %v5065_v25  ;;  %1785 = vmatpush1.bf16.msra.mxu1 %v5068_v26  ;;  %v5167_v25 = vld [vmem:[#allocation4 + $0x18c] ss:$16 sps:$4 sm:$0xff]   ;;  %v5162_v26 = vld [vmem:[#allocation4 + $0x180] ss:$16 sps:$4 sm:$0xff]  }
 0x108   :  { %1614 = vmatprep.subr.bf16.mxu0 %v5073_v27  ;;  %1786 = vmatprep.subr.bf16.mxu1 %v5076_v28  ;;  %v5165_v27 = vld [vmem:[#allocation4 + $0x188] ss:$16 sps:$4 sm:$0xff]   ;;  %v5170_v28 = vld [vmem:[#allocation4 + $0x1a4] ss:$16 sps:$4 sm:$0xff]  }
 0x10b   :  { %1615 = vmatpush1.bf16.msra.mxu0 %v5071_v29  ;;  %1787 = vmatpush1.bf16.msra.mxu1 %v5074_v30  ;;  %v5173_v29 = vld [vmem:[#allocation4 + $0x1ac] ss:$16 sps:$4 sm:$0xff]   ;;  %v5168_v30 = vld [vmem:[#allocation4 + $0x1a0] ss:$16 sps:$4 sm:$0xff]  }
 0x10c   :  { %1616 = vmatprep.subr.bf16.mxu0 %v5079_v31  ;;  %1788 = vmatprep.subr.bf16.mxu1 %v5082_v32  ;;  %v5171_v31 = vld [vmem:[#allocation4 + $0x1a8] ss:$16 sps:$4 sm:$0xff]   ;;  %v5176_v32 = vld [vmem:[#allocation4 + $0x1c4] ss:$16 sps:$4 sm:$0xff]  }
 0x10f   :  { %1617 = vmatpush1.bf16.msra.mxu0 %v5077_v33  ;;  %1789 = vmatpush1.bf16.msra.mxu1 %v5080_v34  ;;  %v5179_v33 = vld [vmem:[#allocation4 + $0x1cc] ss:$16 sps:$4 sm:$0xff]   ;;  %v5174_v34 = vld [vmem:[#allocation4 + $0x1c0] ss:$16 sps:$4 sm:$0xff]  }
 0x110   :  { %1618 = vmatprep.subr.bf16.mxu0 %v5085_v35  ;;  %1790 = vmatprep.subr.bf16.mxu1 %v5088_v36  ;;  %v5177_v35 = vld [vmem:[#allocation4 + $0x1c8] ss:$16 sps:$4 sm:$0xff]   ;;  %v5182_v36 = vld [vmem:[#allocation4 + $0x1e4] ss:$16 sps:$4 sm:$0xff]  }
 0x113   :  { %1619 = vmatpush1.bf16.msra.mxu0 %v5083_v37  ;;  %1791 = vmatpush1.bf16.msra.mxu1 %v5086_v38  ;;  %v5185_v37 = vld [vmem:[#allocation4 + $0x1ec] ss:$16 sps:$4 sm:$0xff]   ;;  %v5180_v38 = vld [vmem:[#allocation4 + $0x1e0] ss:$16 sps:$4 sm:$0xff]  }
 0x114   :  { %2614 = vmatprep.subr.bf16.mxu0 %v5092_v39  ;;  %2700 = vmatprep.subr.bf16.mxu1 %v5095_v40  ;;  %v5183_v39 = vld [vmem:[#allocation4 + $0x1e8] ss:$16 sps:$4 sm:$0xff]   ;;  %v5188_v40 = vld [vmem:[#allocation4 + $0x204] ss:$16 sps:$4 sm:$0xff]  }
 0x116   :  { %1637 = vmatmul.mubr.bf16.vlgmr.msra.gmra.mrb[0].mxu0 %v5089_v41  ;;  %1809 = vmatmul.mubr.bf16.vlgmr.msra.gmra.mrb[0].mxu1 %v5089_v41  ;;  %v5191_v41 = vld [vmem:[#allocation4 + $0x20c] ss:$16 sps:$4 sm:$0xff]  }
 0x117   :  { %2615 = vmatpush1.bf16.msra.mxu0 %v5090_v42  ;;  %2701 = vmatpush1.bf16.msra.mxu1 %v5093_v43  ;;  %v299_v42 = vlaneseq }
 0x118   :  { %2616 = vmatprep.subr.bf16.mxu0 %v5098_v44  ;;  %2702 = vmatprep.subr.bf16.mxu1 %v5101_v45 }
 0x119   :  { %v300_v43 = vshrl.u32 %v299_v42, 7  ;;  %v5237_v42 = vld [vmem:[#allocation4 + $0x308] ss:$16 sps:$4 sm:$0xff]  }
 0x11b   :  { %2617 = vmatpush1.bf16.msra.mxu0 %v5096_v46  ;;  %2703 = vmatpush1.bf16.msra.mxu1 %v5099_v47  ;;  %v5690_v44 = vsub.s32 0, %v300_v43  ;;  %v5692_v45 = vsub.s32 2, %v300_v43  ;;  %v297_v46 = vld [vmem:[%s5837_s5] ss:$4 sm:$0xf]  ;;  %v5697_v47 = vsub.s32 1, %v300_v43 }
 0x11c   :  { %2618 = vmatprep.subr.bf16.mxu0 %v5104_v48  ;;  %2704 = vmatprep.subr.bf16.mxu1 %v5107_v49  ;;  %v5699_v48 = vsub.s32 3, %v300_v43  ;;  %v5242_v43 = vld [vmem:[#allocation4 + $0x324] ss:$16 sps:$4 sm:$0xff]  }
 0x11d   :  { %v302_v49 = vrot.slane %v297_v46, %v5690_v44 }
 0x11f   :  { %2619 = vmatpush1.bf16.msra.mxu0 %v5102_v50  ;;  %2705 = vmatpush1.bf16.msra.mxu1 %v5105_v51  ;;  %v310_v50 = vrot.slane %v297_v46, %v5692_v45 }
 0x120   :  { %2620 = vmatprep.subr.bf16.mxu0 %v5110_v52  ;;  %2706 = vmatprep.subr.bf16.mxu1 %v5113_v53  ;;  %v306_v53 = vrot.slane %v297_v46, %v5697_v47 }
 0x123   :  { %2621 = vmatpush1.bf16.msra.mxu0 %v5108_v54  ;;  %2707 = vmatpush1.bf16.msra.mxu1 %v5111_v55  ;;  %v314_v54 = vrot.slane %v297_v46, %v5699_v48  ;;  %v5245_v46 = vld [vmem:[#allocation4 + $0x32c] ss:$16 sps:$4 sm:$0xff]  }
 0x124   :  { %2622 = vmatprep.subr.bf16.mxu0 %v5116_v56  ;;  %2708 = vmatprep.subr.bf16.mxu1 %v5119_v57 }
 0x127   :  { %2623 = vmatpush1.bf16.msra.mxu0 %v5114_v58  ;;  %2709 = vmatpush1.bf16.msra.mxu1 %v5117_v59 }
 0x128   :  { %2624 = vmatprep.subr.bf16.mxu0 %v5122_v60  ;;  %2710 = vmatprep.subr.bf16.mxu1 %v5125_v61 }
 0x12b   :  { %2625 = vmatpush1.bf16.msra.mxu0 %v5120_v62  ;;  %2711 = vmatpush1.bf16.msra.mxu1 %v5123_v63 }
 0x12c   :  { %2626 = vmatprep.subr.bf16.mxu0 %v5128_v0  ;;  %2712 = vmatprep.subr.bf16.mxu1 %v5131_v1 }
 0x12f   :  { %2627 = vmatpush1.bf16.msra.mxu0 %v5126_v2  ;;  %2713 = vmatpush1.bf16.msra.mxu1 %v5129_v3 }
 0x130   :  { %2628 = vmatprep.subr.bf16.mxu0 %v5134_v4  ;;  %2714 = vmatprep.subr.bf16.mxu1 %v5137_v5 }
 0x133   :  { %2629 = vmatpush1.bf16.msra.mxu0 %v5132_v6  ;;  %2715 = vmatpush1.bf16.msra.mxu1 %v5135_v7 }
 0x134   :  { %2630 = vmatprep.subr.bf16.mxu0 %v5140_v8  ;;  %2716 = vmatprep.subr.bf16.mxu1 %v5143_v9  ;;  %v5186_v9 = vld [vmem:[#allocation4 + $0x200] ss:$16 sps:$4 sm:$0xff]  }
 0x137   :  { %2631 = vmatpush1.bf16.msra.mxu0 %v5138_v10  ;;  %2717 = vmatpush1.bf16.msra.mxu1 %v5141_v11  ;;  %v5189_v10 = vld [vmem:[#allocation4 + $0x208] ss:$16 sps:$4 sm:$0xff]   ;;  %v5194_v11 = vld [vmem:[#allocation4 + $0x224] ss:$16 sps:$4 sm:$0xff]  }
 0x138   :  { %2632 = vmatprep.subr.bf16.mxu0 %v5146_v12  ;;  %2718 = vmatprep.subr.bf16.mxu1 %v5149_v13  ;;  %v5197_v12 = vld [vmem:[#allocation4 + $0x22c] ss:$16 sps:$4 sm:$0xff]   ;;  %v5192_v13 = vld [vmem:[#allocation4 + $0x220] ss:$16 sps:$4 sm:$0xff]  }
 0x13b   :  { %2633 = vmatpush1.bf16.msra.mxu0 %v5144_v14  ;;  %2719 = vmatpush1.bf16.msra.mxu1 %v5147_v15  ;;  %v5195_v14 = vld [vmem:[#allocation4 + $0x228] ss:$16 sps:$4 sm:$0xff]   ;;  %v5200_v15 = vld [vmem:[#allocation4 + $0x244] ss:$16 sps:$4 sm:$0xff]  }
 0x13c   :  { %2634 = vmatprep.subr.bf16.mxu0 %v5152_v16  ;;  %2720 = vmatprep.subr.bf16.mxu1 %v5155_v17  ;;  %v5203_v16 = vld [vmem:[#allocation4 + $0x24c] ss:$16 sps:$4 sm:$0xff]   ;;  %v5198_v17 = vld [vmem:[#allocation4 + $0x240] ss:$16 sps:$4 sm:$0xff]  }
 0x13f   :  { %2635 = vmatpush1.bf16.msra.mxu0 %v5150_v18  ;;  %2721 = vmatpush1.bf16.msra.mxu1 %v5153_v19  ;;  %v5201_v18 = vld [vmem:[#allocation4 + $0x248] ss:$16 sps:$4 sm:$0xff]   ;;  %v5206_v19 = vld [vmem:[#allocation4 + $0x264] ss:$16 sps:$4 sm:$0xff]  }
 0x140   :  { %2636 = vmatprep.subr.bf16.mxu0 %v5158_v20  ;;  %2722 = vmatprep.subr.bf16.mxu1 %v5161_v21  ;;  %v5209_v20 = vld [vmem:[#allocation4 + $0x26c] ss:$16 sps:$4 sm:$0xff]   ;;  %v5204_v21 = vld [vmem:[#allocation4 + $0x260] ss:$16 sps:$4 sm:$0xff]  }
 0x143   :  { %2637 = vmatpush1.bf16.msra.mxu0 %v5156_v22  ;;  %2723 = vmatpush1.bf16.msra.mxu1 %v5159_v23  ;;  %v5207_v22 = vld [vmem:[#allocation4 + $0x268] ss:$16 sps:$4 sm:$0xff]   ;;  %v5212_v23 = vld [vmem:[#allocation4 + $0x284] ss:$16 sps:$4 sm:$0xff]  }
 0x144   :  { %2638 = vmatprep.subr.bf16.mxu0 %v5164_v24  ;;  %2724 = vmatprep.subr.bf16.mxu1 %v5167_v25  ;;  %v5215_v24 = vld [vmem:[#allocation4 + $0x28c] ss:$16 sps:$4 sm:$0xff]   ;;  %v5210_v25 = vld [vmem:[#allocation4 + $0x280] ss:$16 sps:$4 sm:$0xff]  }
 0x147   :  { %2639 = vmatpush1.bf16.msra.mxu0 %v5162_v26  ;;  %2725 = vmatpush1.bf16.msra.mxu1 %v5165_v27  ;;  %v5213_v26 = vld [vmem:[#allocation4 + $0x288] ss:$16 sps:$4 sm:$0xff]   ;;  %v5218_v27 = vld [vmem:[#allocation4 + $0x2a4] ss:$16 sps:$4 sm:$0xff]  }
 0x148   :  { %2640 = vmatprep.subr.bf16.mxu0 %v5170_v28  ;;  %2726 = vmatprep.subr.bf16.mxu1 %v5173_v29  ;;  %v5221_v28 = vld [vmem:[#allocation4 + $0x2ac] ss:$16 sps:$4 sm:$0xff]   ;;  %v5216_v29 = vld [vmem:[#allocation4 + $0x2a0] ss:$16 sps:$4 sm:$0xff]  }
 0x14b   :  { %2641 = vmatpush1.bf16.msra.mxu0 %v5168_v30  ;;  %2727 = vmatpush1.bf16.msra.mxu1 %v5171_v31  ;;  %v5219_v30 = vld [vmem:[#allocation4 + $0x2a8] ss:$16 sps:$4 sm:$0xff]   ;;  %v5224_v31 = vld [vmem:[#allocation4 + $0x2c4] ss:$16 sps:$4 sm:$0xff]  }
 0x14c   :  { %2642 = vmatprep.subr.bf16.mxu0 %v5176_v32  ;;  %2728 = vmatprep.subr.bf16.mxu1 %v5179_v33  ;;  %v5227_v32 = vld [vmem:[#allocation4 + $0x2cc] ss:$16 sps:$4 sm:$0xff]   ;;  %v5222_v33 = vld [vmem:[#allocation4 + $0x2c0] ss:$16 sps:$4 sm:$0xff]  }
 0x14f   :  { %2643 = vmatpush1.bf16.msra.mxu0 %v5174_v34  ;;  %2729 = vmatpush1.bf16.msra.mxu1 %v5177_v35  ;;  %v5225_v34 = vld [vmem:[#allocation4 + $0x2c8] ss:$16 sps:$4 sm:$0xff]   ;;  %v5230_v35 = vld [vmem:[#allocation4 + $0x2e4] ss:$16 sps:$4 sm:$0xff]  }
 0x150   :  { %2644 = vmatprep.subr.bf16.mxu0 %v5182_v36  ;;  %2730 = vmatprep.subr.bf16.mxu1 %v5185_v37  ;;  %v5233_v36 = vld [vmem:[#allocation4 + $0x2ec] ss:$16 sps:$4 sm:$0xff]   ;;  %v5228_v37 = vld [vmem:[#allocation4 + $0x2e0] ss:$16 sps:$4 sm:$0xff]  }
 0x153   :  { %2645 = vmatpush1.bf16.msra.mxu0 %v5180_v38  ;;  %2731 = vmatpush1.bf16.msra.mxu1 %v5183_v39  ;;  %v5231_v38 = vld [vmem:[#allocation4 + $0x2e8] ss:$16 sps:$4 sm:$0xff]   ;;  %v5236_v39 = vld [vmem:[#allocation4 + $0x304] ss:$16 sps:$4 sm:$0xff]  }
 0x154   :  { %2657 = vmatprep.subr.bf16.mxu0 %v5188_v40  ;;  %2743 = vmatprep.subr.bf16.mxu1 %v5191_v41  ;;  %v5239_v40 = vld [vmem:[#allocation4 + $0x30c] ss:$16 sps:$4 sm:$0xff]   ;;  %v5234_v41 = vld [vmem:[#allocation4 + $0x300] ss:$16 sps:$4 sm:$0xff]  }
 0x1e9   :  { %v1638_v51 = vpop.f32.mrb[0].mxu0  ;;  %v1810_v52 = vpop.f32.mrb[0].mxu1 }
 0x1ea   :  { %v1640_v55 = vpop.f32.mrb[1].mxu0  ;;  %v1812_v56 = vpop.f32.mrb[1].mxu1  ;;  %v4674_v59 = vadd.f32 %v1638_v51, %v302_v49  ;;  %v4678_v60 = vadd.f32 %v1810_v52, %v310_v50  ;;  %v5248_v51 = vld [vmem:[#allocation4 + $0x344] ss:$16 sps:$4 sm:$0xff]   ;;  %v5251_v52 = vld [vmem:[#allocation4 + $0x34c] ss:$16 sps:$4 sm:$0xff]  }
 0x1eb   :  { %v1642_v57 = vpop.f32.mrb[2].mxu0  ;;  %v1814_v58 = vpop.f32.mrb[2].mxu1  ;;  %v4675_v1 = vadd.f32 %v1640_v55, %v306_v53  ;;  %v4679_v2 = vadd.f32 %v1812_v56, %v314_v54  ;;  %v5254_v55 = vld [vmem:[#allocation4 + $0x364] ss:$16 sps:$4 sm:$0xff]   ;;  %v5257_v56 = vld [vmem:[#allocation4 + $0x36c] ss:$16 sps:$4 sm:$0xff]  }
 0x1ec   :  { %v4676_v61 = vadd.f32 %v1642_v57, %v302_v49  ;;  %v4680_v62 = vadd.f32 %v1814_v58, %v310_v50  ;;  %v1644_v63 = vpop.f32.mrb[3].mxu0  ;;  %v1816_v0 = vpop.f32.mrb[3].mxu1  ;;  %v5240_v49 = vld [vmem:[#allocation4 + $0x320] ss:$16 sps:$4 sm:$0xff]   ;;  %v5243_v50 = vld [vmem:[#allocation4 + $0x328] ss:$16 sps:$4 sm:$0xff]  }
 0x1ed   :  { %v4677_v3 = vadd.f32 %v1644_v63, %v306_v53  ;;  %v4681_v4 = vadd.f32 %v1816_v0, %v314_v54  ;;  %v5246_v53 = vld [vmem:[#allocation4 + $0x340] ss:$16 sps:$4 sm:$0xff]   ;;  %v5249_v54 = vld [vmem:[#allocation4 + $0x348] ss:$16 sps:$4 sm:$0xff]   ;;  %v5266_v63 = vld [vmem:[#allocation4 + $0x3a4] ss:$16 sps:$4 sm:$0xff]  }
 0x1ee   :  { %v1819_v5 = vpack.c.bf16 %v4676_v61, %v4674_v59  ;;  %v5705_v6 = vpack.c.bf16 %v4680_v62, %v4678_v60  ;;  %v5252_v57 = vld [vmem:[#allocation4 + $0x360] ss:$16 sps:$4 sm:$0xff]   ;;  %v5255_v58 = vld [vmem:[#allocation4 + $0x368] ss:$16 sps:$4 sm:$0xff]   ;;  %v5260_v59 = vld [vmem:[#allocation4 + $0x384] ss:$16 sps:$4 sm:$0xff]  }
 0x1ef   :  { %v1820_v7 = vpack.c.bf16 %v4677_v3, %v4675_v1  ;;  %v1822_v8 = vpack.c.bf16 %v4681_v4, %v4679_v2  ;;  %v5263_v60 = vld [vmem:[#allocation4 + $0x38c] ss:$16 sps:$4 sm:$0xff]   ;;  %v5258_v61 = vld [vmem:[#allocation4 + $0x380] ss:$16 sps:$4 sm:$0xff]   ;;  %v5261_v62 = vld [vmem:[#allocation4 + $0x388] ss:$16 sps:$4 sm:$0xff]  }
 0x1f0   :  { %v5269_v0 = vld [vmem:[#allocation4 + $0x3ac] ss:$16 sps:$4 sm:$0xff]   ;;  %v5264_v1 = vld [vmem:[#allocation4 + $0x3a0] ss:$16 sps:$4 sm:$0xff]   ;;  %v5267_v2 = vld [vmem:[#allocation4 + $0x3a8] ss:$16 sps:$4 sm:$0xff]  }
 0x1f1   :  { %2646 = vmatprep.mubr.bf16.mxu0 %v1820_v7  ;;  %2732 = vmatprep.mubr.bf16.mxu1 %v1820_v7  ;;  %v5272_v3 = vld [vmem:[#allocation4 + $0x3c4] ss:$16 sps:$4 sm:$0xff]   ;;  %v5275_v4 = vld [vmem:[#allocation4 + $0x3cc] ss:$16 sps:$4 sm:$0xff]   ;;  %v5273_v7 = vld [vmem:[#allocation4 + $0x3c8] ss:$16 sps:$4 sm:$0xff]  }
 0x1f2   :  { %2647 = vmatmul.mubr.bf16.vlgmr.msra.gmra.mrb[4].mxu0 %v1819_v5  ;;  %2733 = vmatmul.mubr.bf16.vlgmr.msra.gmra.mrb[4].mxu1 %v1819_v5  ;;  %v5270_v5 = vld [vmem:[#allocation4 + $0x3c0] ss:$16 sps:$4 sm:$0xff]  }
 0x1f3   :  { %2658 = vmatpush1.bf16.msra.mxu0 %v5186_v9  ;;  %2744 = vmatpush1.bf16.msra.mxu1 %v5189_v10  ;;  %v5281_v9 = vld [vmem:[#allocation4 + $0x3ec] ss:$16 sps:$4 sm:$0xff]   ;;  %v5276_v10 = vld [vmem:[#allocation4 + $0x3e0] ss:$16 sps:$4 sm:$0xff]  }
 0x1f4   :  { %2689 = vmatprep.mubr.bf16.mxu0 %v1822_v8  ;;  %2775 = vmatprep.mubr.bf16.mxu1 %v1822_v8  ;;  %v5278_v8 = vld [vmem:[#allocation4 + $0x3e4] ss:$16 sps:$4 sm:$0xff]  }
 0x1f5   :  { %2659 = vmatprep.subr.bf16.mxu0 %v5194_v11  ;;  %2745 = vmatprep.subr.bf16.mxu1 %v5197_v12  ;;  %v5279_v11 = vld [vmem:[#allocation4 + $0x3e8] ss:$16 sps:$4 sm:$0xff]   ;;  %v5284_v12 = vld [vmem:[#allocation6 + $0x4] ss:$16 sps:$4 sm:$0xff]  }
 0x1f7   :  { %2660 = vmatpush1.bf16.msra.mxu0 %v5192_v13  ;;  %2746 = vmatpush1.bf16.msra.mxu1 %v5195_v14  ;;  %v5287_v13 = vld [vmem:[#allocation6 + $0xc] ss:$16 sps:$4 sm:$0xff]   ;;  %v5282_v14 = vld [vmem:[#allocation6] ss:$16 sps:$4 sm:$0xff]  }
 0x1f8   :  { %2661 = vmatprep.subr.bf16.mxu0 %v5200_v15  ;;  %2747 = vmatprep.subr.bf16.mxu1 %v5203_v16  ;;  %v5285_v15 = vld [vmem:[#allocation6 + $0x8] ss:$16 sps:$4 sm:$0xff]   ;;  %v5290_v16 = vld [vmem:[#allocation6 + $0x24] ss:$16 sps:$4 sm:$0xff]  }
 0x1fb   :  { %2662 = vmatpush1.bf16.msra.mxu0 %v5198_v17  ;;  %2748 = vmatpush1.bf16.msra.mxu1 %v5201_v18  ;;  %v5293_v17 = vld [vmem:[#allocation6 + $0x2c] ss:$16 sps:$4 sm:$0xff]   ;;  %v5288_v18 = vld [vmem:[#allocation6 + $0x20] ss:$16 sps:$4 sm:$0xff]  }
 0x1fc   :  { %2663 = vmatprep.subr.bf16.mxu0 %v5206_v19  ;;  %2749 = vmatprep.subr.bf16.mxu1 %v5209_v20  ;;  %v5291_v19 = vld [vmem:[#allocation6 + $0x28] ss:$16 sps:$4 sm:$0xff]   ;;  %v5296_v20 = vld [vmem:[#allocation6 + $0x44] ss:$16 sps:$4 sm:$0xff]  }
 0x1ff   :  { %2664 = vmatpush1.bf16.msra.mxu0 %v5204_v21  ;;  %2750 = vmatpush1.bf16.msra.mxu1 %v5207_v22  ;;  %v5299_v21 = vld [vmem:[#allocation6 + $0x4c] ss:$16 sps:$4 sm:$0xff]   ;;  %v5294_v22 = vld [vmem:[#allocation6 + $0x40] ss:$16 sps:$4 sm:$0xff]  }
 0x200   :  { %2665 = vmatprep.subr.bf16.mxu0 %v5212_v23  ;;  %2751 = vmatprep.subr.bf16.mxu1 %v5215_v24  ;;  %v5297_v23 = vld [vmem:[#allocation6 + $0x48] ss:$16 sps:$4 sm:$0xff]   ;;  %v5302_v24 = vld [vmem:[#allocation6 + $0x64] ss:$16 sps:$4 sm:$0xff]  }
 0x203   :  { %2666 = vmatpush1.bf16.msra.mxu0 %v5210_v25  ;;  %2752 = vmatpush1.bf16.msra.mxu1 %v5213_v26  ;;  %v5305_v25 = vld [vmem:[#allocation6 + $0x6c] ss:$16 sps:$4 sm:$0xff]   ;;  %v5300_v26 = vld [vmem:[#allocation6 + $0x60] ss:$16 sps:$4 sm:$0xff]  }
 0x204   :  { %2667 = vmatprep.subr.bf16.mxu0 %v5218_v27  ;;  %2753 = vmatprep.subr.bf16.mxu1 %v5221_v28  ;;  %v5308_v27 = vld [vmem:[#allocation6 + $0x84] ss:$16 sps:$4 sm:$0xff]   ;;  %v5311_v28 = vld [vmem:[#allocation6 + $0x8c] ss:$16 sps:$4 sm:$0xff]  }
 0x207   :  { %2668 = vmatpush1.bf16.msra.mxu0 %v5216_v29  ;;  %2754 = vmatpush1.bf16.msra.mxu1 %v5219_v30  ;;  %v5306_v29 = vld [vmem:[#allocation6 + $0x80] ss:$16 sps:$4 sm:$0xff]   ;;  %v5309_v30 = vld [vmem:[#allocation6 + $0x88] ss:$16 sps:$4 sm:$0xff]  }
 0x208   :  { %2669 = vmatprep.subr.bf16.mxu0 %v5224_v31  ;;  %2755 = vmatprep.subr.bf16.mxu1 %v5227_v32  ;;  %v5314_v31 = vld [vmem:[#allocation6 + $0xa4] ss:$16 sps:$4 sm:$0xff]   ;;  %v5317_v32 = vld [vmem:[#allocation6 + $0xac] ss:$16 sps:$4 sm:$0xff]  }
 0x20b   :  { %2670 = vmatpush1.bf16.msra.mxu0 %v5222_v33  ;;  %2756 = vmatpush1.bf16.msra.mxu1 %v5225_v34  ;;  %v5312_v33 = vld [vmem:[#allocation6 + $0xa0] ss:$16 sps:$4 sm:$0xff]   ;;  %v5315_v34 = vld [vmem:[#allocation6 + $0xa8] ss:$16 sps:$4 sm:$0xff]  }
 0x20c   :  { %2671 = vmatprep.subr.bf16.mxu0 %v5230_v35  ;;  %2757 = vmatprep.subr.bf16.mxu1 %v5233_v36  ;;  %v5320_v35 = vld [vmem:[#allocation6 + $0xc4] ss:$16 sps:$4 sm:$0xff]   ;;  %v5323_v36 = vld [vmem:[#allocation6 + $0xcc] ss:$16 sps:$4 sm:$0xff]  }
 0x20f   :  { %2672 = vmatpush1.bf16.msra.mxu0 %v5228_v37  ;;  %2758 = vmatpush1.bf16.msra.mxu1 %v5231_v38  ;;  %v5318_v37 = vld [vmem:[#allocation6 + $0xc0] ss:$16 sps:$4 sm:$0xff]   ;;  %v5321_v38 = vld [vmem:[#allocation6 + $0xc8] ss:$16 sps:$4 sm:$0xff]  }
 0x210   :  { %2673 = vmatprep.subr.bf16.mxu0 %v5236_v39  ;;  %2759 = vmatprep.subr.bf16.mxu1 %v5239_v40  ;;  %v5326_v39 = vld [vmem:[#allocation6 + $0xe4] ss:$16 sps:$4 sm:$0xff]   ;;  %v5329_v40 = vld [vmem:[#allocation6 + $0xec] ss:$16 sps:$4 sm:$0xff]  }
 0x213   :  { %2674 = vmatpush1.bf16.msra.mxu0 %v5234_v41  ;;  %2760 = vmatpush1.bf16.msra.mxu1 %v5237_v42  ;;  %v5324_v41 = vld [vmem:[#allocation6 + $0xe0] ss:$16 sps:$4 sm:$0xff]   ;;  %v5327_v42 = vld [vmem:[#allocation6 + $0xe8] ss:$16 sps:$4 sm:$0xff]  }
 0x214   :  { %2675 = vmatprep.subr.bf16.mxu0 %v5242_v43  ;;  %2761 = vmatprep.subr.bf16.mxu1 %v5245_v46  ;;  %v5332_v43 = vld [vmem:[#allocation6 + $0x104] ss:$16 sps:$4 sm:$0xff]   ;;  %v5335_v46 = vld [vmem:[#allocation6 + $0x10c] ss:$16 sps:$4 sm:$0xff]  }
 0x217   :  { %2676 = vmatpush1.bf16.msra.mxu0 %v5240_v49  ;;  %2762 = vmatpush1.bf16.msra.mxu1 %v5243_v50  ;;  %v5330_v49 = vld [vmem:[#allocation6 + $0x100] ss:$16 sps:$4 sm:$0xff]   ;;  %v5333_v50 = vld [vmem:[#allocation6 + $0x108] ss:$16 sps:$4 sm:$0xff]  }
 0x218   :  { %2677 = vmatprep.subr.bf16.mxu0 %v5248_v51  ;;  %2763 = vmatprep.subr.bf16.mxu1 %v5251_v52  ;;  %v5338_v51 = vld [vmem:[#allocation6 + $0x124] ss:$16 sps:$4 sm:$0xff]   ;;  %v5341_v52 = vld [vmem:[#allocation6 + $0x12c] ss:$16 sps:$4 sm:$0xff]  }
 0x21b   :  { %2678 = vmatpush1.bf16.msra.mxu0 %v5246_v53  ;;  %2764 = vmatpush1.bf16.msra.mxu1 %v5249_v54  ;;  %v5336_v53 = vld [vmem:[#allocation6 + $0x120] ss:$16 sps:$4 sm:$0xff]   ;;  %v5339_v54 = vld [vmem:[#allocation6 + $0x128] ss:$16 sps:$4 sm:$0xff]  }
 0x21c   :  { %2679 = vmatprep.subr.bf16.mxu0 %v5254_v55  ;;  %2765 = vmatprep.subr.bf16.mxu1 %v5257_v56  ;;  %v5344_v55 = vld [vmem:[#allocation6 + $0x144] ss:$16 sps:$4 sm:$0xff]   ;;  %v5347_v56 = vld [vmem:[#allocation6 + $0x14c] ss:$16 sps:$4 sm:$0xff]  }
 0x21f   :  { %2680 = vmatpush1.bf16.msra.mxu0 %v5252_v57  ;;  %2766 = vmatpush1.bf16.msra.mxu1 %v5255_v58  ;;  %v5342_v57 = vld [vmem:[#allocation6 + $0x140] ss:$16 sps:$4 sm:$0xff]   ;;  %v5345_v58 = vld [vmem:[#allocation6 + $0x148] ss:$16 sps:$4 sm:$0xff]  }
 0x220   :  { %2681 = vmatprep.subr.bf16.mxu0 %v5260_v59  ;;  %2767 = vmatprep.subr.bf16.mxu1 %v5263_v60  ;;  %v5350_v59 = vld [vmem:[#allocation6 + $0x164] ss:$16 sps:$4 sm:$0xff]   ;;  %v5353_v60 = vld [vmem:[#allocation6 + $0x16c] ss:$16 sps:$4 sm:$0xff]  }
 0x223   :  { %2682 = vmatpush1.bf16.msra.mxu0 %v5258_v61  ;;  %2768 = vmatpush1.bf16.msra.mxu1 %v5261_v62  ;;  %v5348_v61 = vld [vmem:[#allocation6 + $0x160] ss:$16 sps:$4 sm:$0xff]   ;;  %v5351_v62 = vld [vmem:[#allocation6 + $0x168] ss:$16 sps:$4 sm:$0xff]  }
 0x224   :  { %2683 = vmatprep.subr.bf16.mxu0 %v5266_v63  ;;  %2769 = vmatprep.subr.bf16.mxu1 %v5269_v0  ;;  %v5356_v63 = vld [vmem:[#allocation6 + $0x184] ss:$16 sps:$4 sm:$0xff]   ;;  %v5359_v0 = vld [vmem:[#allocation6 + $0x18c] ss:$16 sps:$4 sm:$0xff]  }
 0x227   :  { %2684 = vmatpush1.bf16.msra.mxu0 %v5264_v1  ;;  %2770 = vmatpush1.bf16.msra.mxu1 %v5267_v2  ;;  %v5354_v1 = vld [vmem:[#allocation6 + $0x180] ss:$16 sps:$4 sm:$0xff]   ;;  %v5357_v2 = vld [vmem:[#allocation6 + $0x188] ss:$16 sps:$4 sm:$0xff]  }
 0x228   :  { %2685 = vmatprep.subr.bf16.mxu0 %v5272_v3  ;;  %2771 = vmatprep.subr.bf16.mxu1 %v5275_v4  ;;  %v5362_v3 = vld [vmem:[#allocation6 + $0x1a4] ss:$16 sps:$4 sm:$0xff]   ;;  %v5365_v4 = vld [vmem:[#allocation6 + $0x1ac] ss:$16 sps:$4 sm:$0xff]  }
 0x22b   :  { %2686 = vmatpush1.bf16.msra.mxu0 %v5270_v5  ;;  %2772 = vmatpush1.bf16.msra.mxu1 %v5273_v7  ;;  %v5360_v5 = vld [vmem:[#allocation6 + $0x1a0] ss:$16 sps:$4 sm:$0xff]   ;;  %v5363_v7 = vld [vmem:[#allocation6 + $0x1a8] ss:$16 sps:$4 sm:$0xff]  }
 0x22c   :  { %2687 = vmatprep.subr.bf16.mxu0 %v5278_v8  ;;  %2773 = vmatprep.subr.bf16.mxu1 %v5281_v9  ;;  %v5368_v8 = vld [vmem:[#allocation6 + $0x1c4] ss:$16 sps:$4 sm:$0xff]   ;;  %v5371_v9 = vld [vmem:[#allocation6 + $0x1cc] ss:$16 sps:$4 sm:$0xff]  }
 0x22f   :  { %2688 = vmatpush1.bf16.msra.mxu0 %v5276_v10  ;;  %2774 = vmatpush1.bf16.msra.mxu1 %v5279_v11  ;;  %v5366_v10 = vld [vmem:[#allocation6 + $0x1c0] ss:$16 sps:$4 sm:$0xff]   ;;  %v5369_v11 = vld [vmem:[#allocation6 + $0x1c8] ss:$16 sps:$4 sm:$0xff]  }
 0x230   :  { %3581 = vmatprep.subr.bf16.mxu0 %v5284_v12  ;;  %3667 = vmatprep.subr.bf16.mxu1 %v5287_v13  ;;  %v5374_v12 = vld [vmem:[#allocation6 + $0x1e4] ss:$16 sps:$4 sm:$0xff]   ;;  %v5377_v13 = vld [vmem:[#allocation6 + $0x1ec] ss:$16 sps:$4 sm:$0xff]  }
 0x232   :  { %2690 = vmatmul.mubr.bf16.vlgmr.msra.gmra.mrb[4].mxu0 %v5705_v6  ;;  %2776 = vmatmul.mubr.bf16.vlgmr.msra.gmra.mrb[4].mxu1 %v5705_v6  ;;  %v5303_v6 = vld [vmem:[#allocation6 + $0x68] ss:$16 sps:$4 sm:$0xff]  }
 0x233   :  { %3582 = vmatpush1.bf16.msra.mxu0 %v5282_v14  ;;  %3668 = vmatpush1.bf16.msra.mxu1 %v5285_v15  ;;  %v5372_v14 = vld [vmem:[#allocation6 + $0x1e0] ss:$16 sps:$4 sm:$0xff]   ;;  %v5375_v15 = vld [vmem:[#allocation6 + $0x1e8] ss:$16 sps:$4 sm:$0xff]  }
 0x234   :  { %3583 = vmatprep.subr.bf16.mxu0 %v5290_v16  ;;  %3669 = vmatprep.subr.bf16.mxu1 %v5293_v17  ;;  %v5380_v16 = vld [vmem:[#allocation6 + $0x204] ss:$16 sps:$4 sm:$0xff]   ;;  %v5383_v17 = vld [vmem:[#allocation6 + $0x20c] ss:$16 sps:$4 sm:$0xff]  }
 0x237   :  { %3584 = vmatpush1.bf16.msra.mxu0 %v5288_v18  ;;  %3670 = vmatpush1.bf16.msra.mxu1 %v5291_v19  ;;  %v4339_v18 = vld [vmem:[%s5837_s5 + $0x1] ss:$4 sm:$0xf] }
 0x238   :  { %3585 = vmatprep.subr.bf16.mxu0 %v5296_v20  ;;  %3671 = vmatprep.subr.bf16.mxu1 %v5299_v21  ;;  %v1957_v19 = vrot.slane %v4339_v18, %v5690_v44  ;;  %v1965_v20 = vrot.slane %v4339_v18, %v5692_v45 }
 0x23b   :  { %3586 = vmatpush1.bf16.msra.mxu0 %v5294_v22  ;;  %3672 = vmatpush1.bf16.msra.mxu1 %v5297_v23  ;;  %v1961_v23 = vrot.slane %v4339_v18, %v5697_v47 }
 0x23c   :  { %3587 = vmatprep.subr.bf16.mxu0 %v5302_v24  ;;  %3673 = vmatprep.subr.bf16.mxu1 %v5305_v25  ;;  %v1969_v24 = vrot.slane %v4339_v18, %v5699_v48  ;;  %v5437_v18 = vld [vmem:[#allocation6 + $0x32c] ss:$16 sps:$4 sm:$0xff]  }
 0x23f   :  { %3588 = vmatpush1.bf16.msra.mxu0 %v5300_v26  ;;  %3674 = vmatpush1.bf16.msra.mxu1 %v5303_v6 }
 0x240   :  { %3589 = vmatprep.subr.bf16.mxu0 %v5308_v27  ;;  %3675 = vmatprep.subr.bf16.mxu1 %v5311_v28 }
 0x243   :  { %3590 = vmatpush1.bf16.msra.mxu0 %v5306_v29  ;;  %3676 = vmatpush1.bf16.msra.mxu1 %v5309_v30 }
 0x244   :  { %3591 = vmatprep.subr.bf16.mxu0 %v5314_v31  ;;  %3677 = vmatprep.subr.bf16.mxu1 %v5317_v32 }
 0x247   :  { %3592 = vmatpush1.bf16.msra.mxu0 %v5312_v33  ;;  %3678 = vmatpush1.bf16.msra.mxu1 %v5315_v34 }
 0x248   :  { %3593 = vmatprep.subr.bf16.mxu0 %v5320_v35  ;;  %3679 = vmatprep.subr.bf16.mxu1 %v5323_v36 }
 0x24b   :  { %3594 = vmatpush1.bf16.msra.mxu0 %v5318_v37  ;;  %3680 = vmatpush1.bf16.msra.mxu1 %v5321_v38 }
 0x24c   :  { %3595 = vmatprep.subr.bf16.mxu0 %v5326_v39  ;;  %3681 = vmatprep.subr.bf16.mxu1 %v5329_v40 }
 0x24f   :  { %3596 = vmatpush1.bf16.msra.mxu0 %v5324_v41  ;;  %3682 = vmatpush1.bf16.msra.mxu1 %v5327_v42  ;;  %v5378_v42 = vld [vmem:[#allocation6 + $0x200] ss:$16 sps:$4 sm:$0xff]  }
 0x250   :  { %3597 = vmatprep.subr.bf16.mxu0 %v5332_v43  ;;  %3683 = vmatprep.subr.bf16.mxu1 %v5335_v46  ;;  %v5381_v43 = vld [vmem:[#allocation6 + $0x208] ss:$16 sps:$4 sm:$0xff]   ;;  %v5386_v46 = vld [vmem:[#allocation6 + $0x224] ss:$16 sps:$4 sm:$0xff]  }
 0x253   :  { %3598 = vmatpush1.bf16.msra.mxu0 %v5330_v49  ;;  %3684 = vmatpush1.bf16.msra.mxu1 %v5333_v50  ;;  %v5389_v49 = vld [vmem:[#allocation6 + $0x22c] ss:$16 sps:$4 sm:$0xff]   ;;  %v5384_v50 = vld [vmem:[#allocation6 + $0x220] ss:$16 sps:$4 sm:$0xff]  }
 0x254   :  { %3599 = vmatprep.subr.bf16.mxu0 %v5338_v51  ;;  %3685 = vmatprep.subr.bf16.mxu1 %v5341_v52  ;;  %v5387_v51 = vld [vmem:[#allocation6 + $0x228] ss:$16 sps:$4 sm:$0xff]   ;;  %v5392_v52 = vld [vmem:[#allocation6 + $0x244] ss:$16 sps:$4 sm:$0xff]  }
 0x257   :  { %3600 = vmatpush1.bf16.msra.mxu0 %v5336_v53  ;;  %3686 = vmatpush1.bf16.msra.mxu1 %v5339_v54  ;;  %v5395_v53 = vld [vmem:[#allocation6 + $0x24c] ss:$16 sps:$4 sm:$0xff]   ;;  %v5390_v54 = vld [vmem:[#allocation6 + $0x240] ss:$16 sps:$4 sm:$0xff]  }
 0x258   :  { %3601 = vmatprep.subr.bf16.mxu0 %v5344_v55  ;;  %3687 = vmatprep.subr.bf16.mxu1 %v5347_v56  ;;  %v5393_v55 = vld [vmem:[#allocation6 + $0x248] ss:$16 sps:$4 sm:$0xff]   ;;  %v5398_v56 = vld [vmem:[#allocation6 + $0x264] ss:$16 sps:$4 sm:$0xff]  }
 0x25b   :  { %3602 = vmatpush1.bf16.msra.mxu0 %v5342_v57  ;;  %3688 = vmatpush1.bf16.msra.mxu1 %v5345_v58  ;;  %v5401_v57 = vld [vmem:[#allocation6 + $0x26c] ss:$16 sps:$4 sm:$0xff]   ;;  %v5396_v58 = vld [vmem:[#allocation6 + $0x260] ss:$16 sps:$4 sm:$0xff]  }
 0x25c   :  { %3603 = vmatprep.subr.bf16.mxu0 %v5350_v59  ;;  %3689 = vmatprep.subr.bf16.mxu1 %v5353_v60  ;;  %v5399_v59 = vld [vmem:[#allocation6 + $0x268] ss:$16 sps:$4 sm:$0xff]   ;;  %v5404_v60 = vld [vmem:[#allocation6 + $0x284] ss:$16 sps:$4 sm:$0xff]  }
 0x25f   :  { %3604 = vmatpush1.bf16.msra.mxu0 %v5348_v61  ;;  %3690 = vmatpush1.bf16.msra.mxu1 %v5351_v62  ;;  %v5407_v61 = vld [vmem:[#allocation6 + $0x28c] ss:$16 sps:$4 sm:$0xff]   ;;  %v5402_v62 = vld [vmem:[#allocation6 + $0x280] ss:$16 sps:$4 sm:$0xff]  }
 0x260   :  { %3605 = vmatprep.subr.bf16.mxu0 %v5356_v63  ;;  %3691 = vmatprep.subr.bf16.mxu1 %v5359_v0  ;;  %v5405_v63 = vld [vmem:[#allocation6 + $0x288] ss:$16 sps:$4 sm:$0xff]   ;;  %v5410_v0 = vld [vmem:[#allocation6 + $0x2a4] ss:$16 sps:$4 sm:$0xff]  }
 0x263   :  { %3606 = vmatpush1.bf16.msra.mxu0 %v5354_v1  ;;  %3692 = vmatpush1.bf16.msra.mxu1 %v5357_v2  ;;  %v5413_v1 = vld [vmem:[#allocation6 + $0x2ac] ss:$16 sps:$4 sm:$0xff]   ;;  %v5408_v2 = vld [vmem:[#allocation6 + $0x2a0] ss:$16 sps:$4 sm:$0xff]  }
 0x264   :  { %3607 = vmatprep.subr.bf16.mxu0 %v5362_v3  ;;  %3693 = vmatprep.subr.bf16.mxu1 %v5365_v4  ;;  %v5411_v3 = vld [vmem:[#allocation6 + $0x2a8] ss:$16 sps:$4 sm:$0xff]   ;;  %v5416_v4 = vld [vmem:[#allocation6 + $0x2c4] ss:$16 sps:$4 sm:$0xff]  }
 0x267   :  { %3608 = vmatpush1.bf16.msra.mxu0 %v5360_v5  ;;  %3694 = vmatpush1.bf16.msra.mxu1 %v5363_v7  ;;  %v5419_v5 = vld [vmem:[#allocation6 + $0x2cc] ss:$16 sps:$4 sm:$0xff]   ;;  %v5414_v7 = vld [vmem:[#allocation6 + $0x2c0] ss:$16 sps:$4 sm:$0xff]  }
 0x268   :  { %3609 = vmatprep.subr.bf16.mxu0 %v5368_v8  ;;  %3695 = vmatprep.subr.bf16.mxu1 %v5371_v9  ;;  %v5417_v8 = vld [vmem:[#allocation6 + $0x2c8] ss:$16 sps:$4 sm:$0xff]   ;;  %v5422_v9 = vld [vmem:[#allocation6 + $0x2e4] ss:$16 sps:$4 sm:$0xff]  }
 0x26b   :  { %3610 = vmatpush1.bf16.msra.mxu0 %v5366_v10  ;;  %3696 = vmatpush1.bf16.msra.mxu1 %v5369_v11  ;;  %v5425_v10 = vld [vmem:[#allocation6 + $0x2ec] ss:$16 sps:$4 sm:$0xff]   ;;  %v5420_v11 = vld [vmem:[#allocation6 + $0x2e0] ss:$16 sps:$4 sm:$0xff]  }
 0x26c   :  { %3611 = vmatprep.subr.bf16.mxu0 %v5374_v12  ;;  %3697 = vmatprep.subr.bf16.mxu1 %v5377_v13  ;;  %v5423_v12 = vld [vmem:[#allocation6 + $0x2e8] ss:$16 sps:$4 sm:$0xff]   ;;  %v5428_v13 = vld [vmem:[#allocation6 + $0x304] ss:$16 sps:$4 sm:$0xff]  }
 0x26f   :  { %3612 = vmatpush1.bf16.msra.mxu0 %v5372_v14  ;;  %3698 = vmatpush1.bf16.msra.mxu1 %v5375_v15  ;;  %v5431_v14 = vld [vmem:[#allocation6 + $0x30c] ss:$16 sps:$4 sm:$0xff]   ;;  %v5426_v15 = vld [vmem:[#allocation6 + $0x300] ss:$16 sps:$4 sm:$0xff]  }
 0x270   :  { %3624 = vmatprep.subr.bf16.mxu0 %v5380_v16  ;;  %3710 = vmatprep.subr.bf16.mxu1 %v5383_v17  ;;  %v5429_v16 = vld [vmem:[#allocation6 + $0x308] ss:$16 sps:$4 sm:$0xff]   ;;  %v5434_v17 = vld [vmem:[#allocation6 + $0x324] ss:$16 sps:$4 sm:$0xff]  }
 0x305   :  { %v2691_v21 = vpop.f32.mrb[4].mxu0  ;;  %v2777_v22 = vpop.f32.mrb[4].mxu1 }
 0x306   :  { %v2693_v25 = vpop.f32.mrb[5].mxu0  ;;  %v2779_v26 = vpop.f32.mrb[5].mxu1  ;;  %v4682_v28 = vadd.f32 %v2691_v21, %v1957_v19  ;;  %v4686_v29 = vadd.f32 %v2777_v22, %v1965_v20  ;;  %v5440_v21 = vld [vmem:[#allocation6 + $0x344] ss:$16 sps:$4 sm:$0xff]   ;;  %v5443_v22 = vld [vmem:[#allocation6 + $0x34c] ss:$16 sps:$4 sm:$0xff]  }
 0x307   :  { %v2695_v6 = vpop.f32.mrb[6].mxu0  ;;  %v2781_v27 = vpop.f32.mrb[6].mxu1  ;;  %v4683_v34 = vadd.f32 %v2693_v25, %v1961_v23  ;;  %v4687_v35 = vadd.f32 %v2779_v26, %v1969_v24  ;;  %v5446_v25 = vld [vmem:[#allocation6 + $0x364] ss:$16 sps:$4 sm:$0xff]   ;;  %v5449_v26 = vld [vmem:[#allocation6 + $0x36c] ss:$16 sps:$4 sm:$0xff]  }
 0x308   :  { %v4684_v30 = vadd.f32 %v2695_v6, %v1957_v19  ;;  %v4688_v31 = vadd.f32 %v2781_v27, %v1965_v20  ;;  %v2697_v32 = vpop.f32.mrb[7].mxu0  ;;  %v2783_v33 = vpop.f32.mrb[7].mxu1  ;;  %v5432_v19 = vld [vmem:[#allocation6 + $0x320] ss:$16 sps:$4 sm:$0xff]   ;;  %v5435_v20 = vld [vmem:[#allocation6 + $0x328] ss:$16 sps:$4 sm:$0xff]  }
 0x309   :  { %v4685_v36 = vadd.f32 %v2697_v32, %v1961_v23  ;;  %v4689_v37 = vadd.f32 %v2783_v33, %v1969_v24  ;;  %v5438_v23 = vld [vmem:[#allocation6 + $0x340] ss:$16 sps:$4 sm:$0xff]   ;;  %v5441_v24 = vld [vmem:[#allocation6 + $0x348] ss:$16 sps:$4 sm:$0xff]   ;;  %v5458_v32 = vld [vmem:[#allocation6 + $0x3a4] ss:$16 sps:$4 sm:$0xff]  }
 0x30a   :  { %v2786_v38 = vpack.c.bf16 %v4684_v30, %v4682_v28  ;;  %v5716_v39 = vpack.c.bf16 %v4688_v31, %v4686_v29  ;;  %v5444_v6 = vld [vmem:[#allocation6 + $0x360] ss:$16 sps:$4 sm:$0xff]   ;;  %v5447_v27 = vld [vmem:[#allocation6 + $0x368] ss:$16 sps:$4 sm:$0xff]   ;;  %v5452_v28 = vld [vmem:[#allocation6 + $0x384] ss:$16 sps:$4 sm:$0xff]  }
 0x30b   :  { %v2787_v40 = vpack.c.bf16 %v4685_v36, %v4683_v34  ;;  %v2789_v41 = vpack.c.bf16 %v4689_v37, %v4687_v35  ;;  %v5455_v29 = vld [vmem:[#allocation6 + $0x38c] ss:$16 sps:$4 sm:$0xff]   ;;  %v5450_v30 = vld [vmem:[#allocation6 + $0x380] ss:$16 sps:$4 sm:$0xff]   ;;  %v5453_v31 = vld [vmem:[#allocation6 + $0x388] ss:$16 sps:$4 sm:$0xff]  }
 0x30c   :  { %v5461_v33 = vld [vmem:[#allocation6 + $0x3ac] ss:$16 sps:$4 sm:$0xff]   ;;  %v5456_v34 = vld [vmem:[#allocation6 + $0x3a0] ss:$16 sps:$4 sm:$0xff]   ;;  %v5459_v35 = vld [vmem:[#allocation6 + $0x3a8] ss:$16 sps:$4 sm:$0xff]  }
 0x30d   :  { %3613 = vmatprep.mubr.bf16.mxu0 %v2787_v40  ;;  %3699 = vmatprep.mubr.bf16.mxu1 %v2787_v40  ;;  %v5464_v36 = vld [vmem:[#allocation6 + $0x3c4] ss:$16 sps:$4 sm:$0xff]   ;;  %v5467_v37 = vld [vmem:[#allocation6 + $0x3cc] ss:$16 sps:$4 sm:$0xff]   ;;  %v5465_v40 = vld [vmem:[#allocation6 + $0x3c8] ss:$16 sps:$4 sm:$0xff]  }
 0x30e   :  { %3614 = vmatmul.mubr.bf16.vlgmr.msra.gmra.mrb[8].mxu0 %v2786_v38  ;;  %3700 = vmatmul.mubr.bf16.vlgmr.msra.gmra.mrb[8].mxu1 %v2786_v38  ;;  %v5462_v38 = vld [vmem:[#allocation6 + $0x3c0] ss:$16 sps:$4 sm:$0xff]  }
 0x30f   :  { %3625 = vmatpush1.bf16.msra.mxu0 %v5378_v42  ;;  %3711 = vmatpush1.bf16.msra.mxu1 %v5381_v43  ;;  %v5473_v42 = vld [vmem:[#allocation6 + $0x3ec] ss:$16 sps:$4 sm:$0xff]   ;;  %v5468_v43 = vld [vmem:[#allocation6 + $0x3e0] ss:$16 sps:$4 sm:$0xff]  }
 0x310   :  { %3656 = vmatprep.mubr.bf16.mxu0 %v2789_v41  ;;  %3742 = vmatprep.mubr.bf16.mxu1 %v2789_v41  ;;  %v5470_v41 = vld [vmem:[#allocation6 + $0x3e4] ss:$16 sps:$4 sm:$0xff]  }
 0x311   :  { %3626 = vmatprep.subr.bf16.mxu0 %v5386_v46  ;;  %3712 = vmatprep.subr.bf16.mxu1 %v5389_v49  ;;  %v5471_v46 = vld [vmem:[#allocation6 + $0x3e8] ss:$16 sps:$4 sm:$0xff]   ;;  %v5474_v49 = vld [vmem:[%s5836_s4 + $0x40] sm:$0xff]  }
 0x313   :  { %3627 = vmatpush1.bf16.msra.mxu0 %v5384_v50  ;;  %3713 = vmatpush1.bf16.msra.mxu1 %v5387_v51  ;;  %v5475_v50 = vld [vmem:[%s5836_s4 + $0xc0] sm:$0xff]  }
 0x314   :  { %3628 = vmatprep.subr.bf16.mxu0 %v5392_v52  ;;  %3714 = vmatprep.subr.bf16.mxu1 %v5395_v53  ;;  %v5476_v51 = vld [vmem:[%s5836_s4] sm:$0xff]   ;;  %v5478_v53 = vld [vmem:[%s5836_s4 + $0x48] sm:$0xff]  }
 0x315   :  { %v5477_v52 = vld [vmem:[%s5836_s4 + $0x80] sm:$0xff]  }
 0x317   :  { %3629 = vmatpush1.bf16.msra.mxu0 %v5390_v54  ;;  %3715 = vmatpush1.bf16.msra.mxu1 %v5393_v55  ;;  %v5479_v54 = vld [vmem:[%s5836_s4 + $0xc8] sm:$0xff]  }
 0x318   :  { %3630 = vmatprep.subr.bf16.mxu0 %v5398_v56  ;;  %3716 = vmatprep.subr.bf16.mxu1 %v5401_v57  ;;  %v5480_v55 = vld [vmem:[%s5836_s4 + $0x8] sm:$0xff]   ;;  %v5482_v57 = vld [vmem:[%s5836_s4 + $0x50] sm:$0xff]  }
 0x319   :  { %v5481_v56 = vld [vmem:[%s5836_s4 + $0x88] sm:$0xff]  }
 0x31b   :  { %3631 = vmatpush1.bf16.msra.mxu0 %v5396_v58  ;;  %3717 = vmatpush1.bf16.msra.mxu1 %v5399_v59  ;;  %v5484_v58 = vld [vmem:[%s5836_s4 + $0x10] sm:$0xff]  }
 0x31c   :  { %3632 = vmatprep.subr.bf16.mxu0 %v5404_v60  ;;  %3718 = vmatprep.subr.bf16.mxu1 %v5407_v61  ;;  %v5485_v59 = vld [vmem:[%s5836_s4 + $0x90] sm:$0xff]   ;;  %v5486_v60 = vld [vmem:[%s5836_s4 + $0x58] sm:$0xff]  }
 0x31d   :  { %v5487_v61 = vld [vmem:[%s5836_s4 + $0xd8] sm:$0xff]  }
 0x31f   :  { %3633 = vmatpush1.bf16.msra.mxu0 %v5402_v62  ;;  %3719 = vmatpush1.bf16.msra.mxu1 %v5405_v63  ;;  %v5488_v62 = vld [vmem:[%s5836_s4 + $0x18] sm:$0xff]  }
 0x320   :  { %3634 = vmatprep.subr.bf16.mxu0 %v5410_v0  ;;  %3720 = vmatprep.subr.bf16.mxu1 %v5413_v1  ;;  %v5489_v63 = vld [vmem:[%s5836_s4 + $0x98] sm:$0xff]   ;;  %v5490_v0 = vld [vmem:[%s5836_s4 + $0x60] sm:$0xff]  }
 0x321   :  { %v5491_v1 = vld [vmem:[%s5836_s4 + $0xe0] sm:$0xff]  }
 0x323   :  { %3635 = vmatpush1.bf16.msra.mxu0 %v5408_v2  ;;  %3721 = vmatpush1.bf16.msra.mxu1 %v5411_v3  ;;  %v5492_v2 = vld [vmem:[%s5836_s4 + $0x20] sm:$0xff]  }
 0x324   :  { %3636 = vmatprep.subr.bf16.mxu0 %v5416_v4  ;;  %3722 = vmatprep.subr.bf16.mxu1 %v5419_v5  ;;  %v5493_v3 = vld [vmem:[%s5836_s4 + $0xa0] sm:$0xff]   ;;  %v5494_v4 = vld [vmem:[%s5836_s4 + $0x68] sm:$0xff]  }
 0x325   :  { %v5495_v5 = vld [vmem:[%s5836_s4 + $0xe8] sm:$0xff]  }
 0x327   :  { %3637 = vmatpush1.bf16.msra.mxu0 %v5414_v7  ;;  %3723 = vmatpush1.bf16.msra.mxu1 %v5417_v8  ;;  %v5496_v7 = vld [vmem:[%s5836_s4 + $0x28] sm:$0xff]  }
 0x328   :  { %3638 = vmatprep.subr.bf16.mxu0 %v5422_v9  ;;  %3724 = vmatprep.subr.bf16.mxu1 %v5425_v10  ;;  %v5497_v8 = vld [vmem:[%s5836_s4 + $0xa8] sm:$0xff]   ;;  %v5498_v9 = vld [vmem:[%s5836_s4 + $0x70] sm:$0xff]  }
 0x329   :  { %v5499_v10 = vld [vmem:[%s5836_s4 + $0xf0] sm:$0xff]  }
 0x32b   :  { %3639 = vmatpush1.bf16.msra.mxu0 %v5420_v11  ;;  %3725 = vmatpush1.bf16.msra.mxu1 %v5423_v12  ;;  %v5500_v11 = vld [vmem:[%s5836_s4 + $0x30] sm:$0xff]  }
 0x32c   :  { %3640 = vmatprep.subr.bf16.mxu0 %v5428_v13  ;;  %3726 = vmatprep.subr.bf16.mxu1 %v5431_v14  ;;  %v5501_v12 = vld [vmem:[%s5836_s4 + $0xb0] sm:$0xff]   ;;  %v5502_v13 = vld [vmem:[%s5836_s4 + $0x78] sm:$0xff]  }
 0x32d   :  { %v5503_v14 = vld [vmem:[%s5836_s4 + $0xf8] sm:$0xff]  }
 0x32f   :  { %3641 = vmatpush1.bf16.msra.mxu0 %v5426_v15  ;;  %3727 = vmatpush1.bf16.msra.mxu1 %v5429_v16  ;;  %v5504_v15 = vld [vmem:[%s5836_s4 + $0x38] sm:$0xff]  }
 0x330   :  { %3642 = vmatprep.subr.bf16.mxu0 %v5434_v17  ;;  %3728 = vmatprep.subr.bf16.mxu1 %v5437_v18  ;;  %v5505_v16 = vld [vmem:[%s5836_s4 + $0xb8] sm:$0xff]   ;;  %v4468_v17 = vld [vmem:[%s5837_s5 + $0x2] ss:$4 sm:$0xf] }
 0x331   :  { %v2924_v18 = vrot.slane %v4468_v17, %v5690_v44 }
 0x333   :  { %3643 = vmatpush1.bf16.msra.mxu0 %v5432_v19  ;;  %3729 = vmatpush1.bf16.msra.mxu1 %v5435_v20  ;;  %v2932_v19 = vrot.slane %v4468_v17, %v5692_v45 }
 0x334   :  { %3644 = vmatprep.subr.bf16.mxu0 %v5440_v21  ;;  %3730 = vmatprep.subr.bf16.mxu1 %v5443_v22  ;;  %v2928_v22 = vrot.slane %v4468_v17, %v5697_v47 }
 0x337   :  { %3645 = vmatpush1.bf16.msra.mxu0 %v5438_v23  ;;  %3731 = vmatpush1.bf16.msra.mxu1 %v5441_v24  ;;  %v2936_v23 = vrot.slane %v4468_v17, %v5699_v48 }
 0x338   :  { %3646 = vmatprep.subr.bf16.mxu0 %v5446_v25  ;;  %3732 = vmatprep.subr.bf16.mxu1 %v5449_v26 }
 0x33b   :  { %3647 = vmatpush1.bf16.msra.mxu0 %v5444_v6  ;;  %3733 = vmatpush1.bf16.msra.mxu1 %v5447_v27 }
 0x33c   :  { %3648 = vmatprep.subr.bf16.mxu0 %v5452_v28  ;;  %3734 = vmatprep.subr.bf16.mxu1 %v5455_v29 }
 0x33f   :  { %3649 = vmatpush1.bf16.msra.mxu0 %v5450_v30  ;;  %3735 = vmatpush1.bf16.msra.mxu1 %v5453_v31 }
 0x340   :  { %3650 = vmatprep.subr.bf16.mxu0 %v5458_v32  ;;  %3736 = vmatprep.subr.bf16.mxu1 %v5461_v33 }
 0x343   :  { %3651 = vmatpush1.bf16.msra.mxu0 %v5456_v34  ;;  %3737 = vmatpush1.bf16.msra.mxu1 %v5459_v35 }
 0x344   :  { %3652 = vmatprep.subr.bf16.mxu0 %v5464_v36  ;;  %3738 = vmatprep.subr.bf16.mxu1 %v5467_v37 }
 0x347   :  { %3653 = vmatpush1.bf16.msra.mxu0 %v5462_v38  ;;  %3739 = vmatpush1.bf16.msra.mxu1 %v5465_v40  ;;  %v4597_v40 = vld [vmem:[%s5837_s5 + $0x3] ss:$0 sm:$0xff] }
 0x348   :  { %3654 = vmatprep.subr.bf16.mxu0 %v5470_v41  ;;  %3740 = vmatprep.subr.bf16.mxu1 %v5473_v42 }
 0x34b   :  { %3655 = vmatpush1.bf16.msra.mxu0 %v5468_v43  ;;  %3741 = vmatpush1.bf16.msra.mxu1 %v5471_v46 }
 0x34c   :  { %4630 = vmatprep.subr.bf16.mxu0 %v5474_v49  ;;  %4652 = vmatprep.subr.bf16.mxu1 %v5475_v50 }
 0x34e   :  { %3657 = vmatmul.mubr.bf16.vlgmr.msra.gmra.mrb[8].mxu0 %v5716_v39  ;;  %3743 = vmatmul.mubr.bf16.vlgmr.msra.gmra.mrb[8].mxu1 %v5716_v39  ;;  %v5483_v39 = vld [vmem:[%s5836_s4 + $0xd0] sm:$0xff]  }
 0x34f   :  { %4631 = vmatpush3.bf16.msra.mxu0 %v5476_v51  ;;  %4653 = vmatpush3.bf16.msra.mxu1 %v5477_v52 }
 0x350   :  { %4632 = vmatprep.subr.bf16.mxu0 %v5478_v53  ;;  %4654 = vmatprep.subr.bf16.mxu1 %v5479_v54 }
 0x353   :  { %4633 = vmatpush3.bf16.msra.mxu0 %v5480_v55  ;;  %4655 = vmatpush3.bf16.msra.mxu1 %v5481_v56 }
 0x354   :  { %4634 = vmatprep.subr.bf16.mxu0 %v5482_v57  ;;  %4656 = vmatprep.subr.bf16.mxu1 %v5483_v39 }
 0x357   :  { %4635 = vmatpush3.bf16.msra.mxu0 %v5484_v58  ;;  %4657 = vmatpush3.bf16.msra.mxu1 %v5485_v59 }
 0x358   :  { %4636 = vmatprep.subr.bf16.mxu0 %v5486_v60  ;;  %4658 = vmatprep.subr.bf16.mxu1 %v5487_v61 }
 0x35b   :  { %4637 = vmatpush3.bf16.msra.mxu0 %v5488_v62  ;;  %4659 = vmatpush3.bf16.msra.mxu1 %v5489_v63 }
 0x35c   :  { %4638 = vmatprep.subr.bf16.mxu0 %v5490_v0  ;;  %4660 = vmatprep.subr.bf16.mxu1 %v5491_v1 }
 0x35f   :  { %4639 = vmatpush3.bf16.msra.mxu0 %v5492_v2  ;;  %4661 = vmatpush3.bf16.msra.mxu1 %v5493_v3 }
 0x360   :  { %4640 = vmatprep.subr.bf16.mxu0 %v5494_v4  ;;  %4662 = vmatprep.subr.bf16.mxu1 %v5495_v5 }
 0x363   :  { %4641 = vmatpush3.bf16.msra.mxu0 %v5496_v7  ;;  %4663 = vmatpush3.bf16.msra.mxu1 %v5497_v8 }
 0x364   :  { %4642 = vmatprep.subr.bf16.mxu0 %v5498_v9  ;;  %4664 = vmatprep.subr.bf16.mxu1 %v5499_v10 }
 0x367   :  { %4643 = vmatpush3.bf16.msra.mxu0 %v5500_v11  ;;  %4665 = vmatpush3.bf16.msra.mxu1 %v5501_v12 }
 0x368   :  { %4644 = vmatprep.subr.bf16.mxu0 %v5502_v13  ;;  %4666 = vmatprep.subr.bf16.mxu1 %v5503_v14 }
 0x36b   :  { %4645 = vmatpush3.bf16.msra.mxu0 %v5504_v15  ;;  %4667 = vmatpush3.bf16.msra.mxu1 %v5505_v16 }
 0x421   :  { %v3658_v20 = vpop.f32.mrb[8].mxu0  ;;  %v3744_v21 = vpop.f32.mrb[8].mxu1 }
 0x422   :  { %v3660_v24 = vpop.f32.mrb[9].mxu0  ;;  %v3746_v25 = vpop.f32.mrb[9].mxu1  ;;  %v4690_v27 = vadd.f32 %v3658_v20, %v2924_v18  ;;  %v4694_v28 = vadd.f32 %v3744_v21, %v2932_v19 }
 0x423   :  { %v3662_v26 = vpop.f32.mrb[10].mxu0  ;;  %v3748_v6 = vpop.f32.mrb[10].mxu1  ;;  %v4691_v33 = vadd.f32 %v3660_v24, %v2928_v22  ;;  %v4695_v44 = vadd.f32 %v3746_v25, %v2936_v23 }
 0x424   :  { %v4692_v29 = vadd.f32 %v3662_v26, %v2924_v18  ;;  %v4696_v30 = vadd.f32 %v3748_v6, %v2932_v19  ;;  %v3664_v31 = vpop.f32.mrb[11].mxu0  ;;  %v3750_v32 = vpop.f32.mrb[11].mxu1 }
 0x425   :  { %v4693_v34 = vadd.f32 %v3664_v31, %v2928_v22  ;;  %v4697_v45 = vadd.f32 %v3750_v32, %v2936_v23 }
 0x426   :  { %v3753_v35 = vpack.c.bf16 %v4692_v29, %v4690_v27  ;;  %v3755_v36 = vpack.c.bf16 %v4696_v30, %v4694_v28 }
 0x427   :  { %v3754_v37 = vpack.c.bf16 %v4693_v34, %v4691_v33  ;;  %v3756_v47 = vpack.c.bf16 %v4697_v45, %v4695_v44 }
 0x429   :  { %4050 = vmatprep.mubr.bf16.mxu0 %v3754_v37  ;;  %4091 = vmatprep.mubr.bf16.mxu1 %v3756_v47 }
 0x42a   :  { %4051 = vmatmul.mubr.bf16.vlgmr.msra.gmra.mrb[12].mxu0 %v3753_v35  ;;  %4092 = vmatmul.mubr.bf16.vlgmr.msra.gmra.mrb[12].mxu1 %v3755_v36 }
 0x4fd   :  { %v4646_v48 = vpop.f32.mrb[12].mxu0  ;;  %v4668_v38 = vpop.f32.mrb[12].mxu1 }
 0x4fe   :  { %v4647_v41 = vpop.f32.mrb[13].mxu0  ;;  %v4669_v42 = vpop.f32.mrb[13].mxu1 }
 0x4ff   :  { %v4648_v43 = vadd.f32 %v4647_v41, %v4646_v48  ;;  %v4670_v46 = vadd.f32 %v4669_v42, %v4668_v38  ;;  %v4649_v49 = vpop.f32.mrb[14].mxu0  ;;  %v4671_v50 = vpop.f32.mrb[14].mxu1 }
 0x500   :  { %v4650_v51 = vpop.f32.mrb[15].mxu0  ;;  %v4672_v52 = vpop.f32.mrb[15].mxu1 }
 0x501   :  { %v4053_v53 = vadd.f32 %v4648_v43, %v4597_v40  ;;  %v4651_v54 = vadd.f32 %v4650_v51, %v4649_v49  ;;  %v4673_v55 = vadd.f32 %v4672_v52, %v4671_v50 }
 0x503   :  { %v4094_v56 = vadd.f32 %v4670_v46, %v4053_v53  ;;  %v4056_v57 = vadd.f32 %v4651_v54, %v4597_v40 }
 0x505   :  { %4100 = vst [vmem:[%s5838_s6] sm:$0xff] %v4094_v56  ;;  %v4097_v39 = vadd.f32 %v4673_v55, %v4056_v57 }
 0x507   :  { %4101 = vst [vmem:[%s5838_s6 + $0x8] sm:$0xff] %v4097_v39 }
 0x508   :  { %4106 = vsyncpa [#allocation3], 1 }
 0x509   :  { %4107 = vsyncpa [#allocation5], 1 }

</bundles_post_ra>
